<compile_context>
chip_gen: v6e
topology: v6e:2x2x1
jax: 0.10.0
libtpu: 0.0.40
codegen_flags: <defaults>
</compile_context>

<pallas_src>
import functools
import math

import jax
import jax.numpy as jnp
from jax.experimental import pallas as pl
from jax.experimental.pallas import tpu as pltpu

LAYER_NORM_EPS = 1e-12


# ------------------------------- helpers ------------------------------------
def _gelu_tanh(y):
    c = math.sqrt(2.0 / math.pi)
    return 0.5 * y * (1.0 + jnp.tanh(c * (y + 0.044715 * y * y * y)))


def _layernorm(y, g, b, eps):
    mu = jnp.mean(y, axis=-1, keepdims=True)
    var = jnp.mean((y - mu) ** 2, axis=-1, keepdims=True)
    return (y - mu) * jax.lax.rsqrt(var + eps) * g + b


@functools.lru_cache(maxsize=None)
def _physical_vmem_bytes():
    try:
        return int(pltpu.get_tpu_info().vmem_capacity_bytes)
    except Exception:
        return 64 << 20                      # conservative (v7x per-core VMEM)


def _attn_q_tile_target():
    # flash-style query tiling kicks in earlier on small-VMEM chips (v7x).
    return 256 if _physical_vmem_bytes() >= (96 << 20) else 128


def _ffn_seq_tile_target():
    # 512-wide tiles reach ~85% of HBM roofline on v5e/v6e; tighter on v7x.
    return 512 if _physical_vmem_bytes() >= (96 << 20) else 256


def _pick_seq_tile(S, target):
    if S <= target:
        return S
    for ts in range(target, 7, -8):
        if S % ts == 0:
            return ts
    return S


def _vmem_limit(est_bytes):
    phys = _physical_vmem_bytes()
    want = int(1.5 * est_bytes) + (4 << 20)          # generous fudge + headroom
    return int(min(max(want, 32 << 20), int(phys * 0.85)))


def _attention_vmem_bytes(S, H, num_heads, q_tile):
    f32, bf = 4, 2
    blk = 2 * (S * H * f32)                              # x (double-buffered)
    blk += 2 * (S * f32)                                 # mask
    blk += 2 * (3 * H * H * bf + 3 * H * f32)            # wqkv + bqkv
    blk += 2 * (H * H * bf + 3 * H * f32)                # wo + bo + LN g/b
    blk += 2 * (S * H * f32 + H * f32)                   # outputs (att, mean)
    inter = (2 * S * H * f32                             # kv f32
             + 2 * S * H * bf                            # k, v head-major bf16
             + q_tile * H * (f32 + bf)                   # q2d + q bf16
             + num_heads * q_tile * S * (2 * f32 + bf)   # scores, exp, p bf16
             + 4 * q_tile * H * f32)                     # ctx, merged, proj, y
    return blk + inter


def _ffn_vmem_bytes(ts, H, inter_dim):
    f32, bf = 4, 2
    blk = 2 * (ts * H * f32)                             # activations in
    blk += 2 * (H * inter_dim * bf + inter_dim * f32)    # w1 + b1
    blk += 2 * (inter_dim * H * bf + H * f32)            # w2 + b2
    blk += 2 * (2 * H * f32)                             # shared LN g/b
    blk += 2 * (ts * H * f32 + H * f32)                  # outputs (y, mean)
    inter = ts * inter_dim * (f32 + bf) + 2 * ts * H * f32
    return blk + inter


# --------------------------- attention kernel --------------------------------
def switch_attention_kernel(route_ref, x_ref, mask_ref, wqkv_ref, bqkv_ref,
                            wo_ref, bo_ref, ln_g_ref, ln_b_ref,
                            out_ref, mean_ref, *, num_heads, q_tile, eps):
    del route_ref                     # consumed by the weight index_maps
    S, H = x_ref.shape[1], x_ref.shape[2]
    hd = H // num_heads
    nq = S // q_tile
    bf16 = jnp.bfloat16

    def split_heads(t2d):             # (rows, H) f32 -> (NH, rows, hd) bf16
        return jnp.stack(
            [t2d[:, h * hd:(h + 1) * hd] for h in range(num_heads)],
            axis=0).astype(bf16)

    # K / V for the full sequence, computed once per batch item.
    x_all = x_ref[0]                                          # (S, H) f32
    kv = jnp.dot(x_all.astype(bf16), wqkv_ref[0, :, H:],
                 preferred_element_type=jnp.float32) + bqkv_ref[0, :, H:]
    k = split_heads(kv[:, :H])                                # (NH, S, hd)
    v = split_heads(kv[:, H:])                                # (NH, S, hd)
    mask_row = mask_ref[0]                                    # (1, S) additive
    ln_g = ln_g_ref[0]                                        # (1, H)
    ln_b = ln_b_ref[0]

    mean_ref[0] = jnp.zeros((1, H), jnp.float32)

    def q_block(qs):
        x_t = x_ref[0, pl.ds(qs, q_tile), :]                  # (tq, H) residual
        # 1/sqrt(hd) is pre-folded into the Q columns of wqkv / bqkv.
        q2d = jnp.dot(x_t.astype(bf16), wqkv_ref[0, :, :H],
                      preferred_element_type=jnp.float32) + bqkv_ref[0, :, :H]
        q = split_heads(q2d)                                  # (NH, tq, hd)
        s = jnp.einsum("hqd,hkd->hqk", q, k,
                       preferred_element_type=jnp.float32)    # (NH, tq, S)
        s = s + mask_row                                      # key mask, once
        s = s - jnp.max(s, axis=-1, keepdims=True)
        p = jnp.exp(s)
        l = jnp.sum(p, axis=-1, keepdims=True)                # (NH, tq, 1)
        ctx = jnp.einsum("hqk,hkd->hqd", p.astype(bf16), v,
                         preferred_element_type=jnp.float32)  # (NH, tq, hd)
        # Deferred softmax normalization: scale ctx (NH*tq*hd), not p (NH*tq*S).
        ctx = ctx * pl.reciprocal(l, approx=True)
        ctx2d = jnp.concatenate([ctx[h] for h in range(num_heads)], axis=-1)
        proj = jnp.dot(ctx2d.astype(bf16), wo_ref[0],
                       preferred_element_type=jnp.float32) + bo_ref[0]
        y = _layernorm(proj + x_t, ln_g, ln_b, eps)
        out_ref[0, pl.ds(qs, q_tile), :] = y
        mean_ref[0] += jnp.sum(y, axis=0, keepdims=True) * (1.0 / S)

    if nq == 1:
        q_block(0)
    else:
        def body(i, carry):
            q_block(pl.multiple_of(i * q_tile, q_tile))
            return carry
        jax.lax.fori_loop(0, nq, body, 0)


def _switch_attention(x, mask3, route, prep, *, num_heads, eps, q_tile=None):
    B, S, H = x.shape
    if q_tile is None:
        q_tile = _pick_seq_tile(S, _attn_q_tile_target())
    q_tile = min(q_tile, S)
    if S % q_tile != 0:
        q_tile = S

    in_specs = [
        pl.BlockSpec((1, S, H), lambda b, r: (b, 0, 0)),          # hidden states
        pl.BlockSpec((1, 1, S), lambda b, r: (b, 0, 0)),          # additive mask
        pl.BlockSpec((1, H, 3 * H), lambda b, r: (r[b], 0, 0)),   # fused QKV w
        pl.BlockSpec((1, 1, 3 * H), lambda b, r: (r[b], 0, 0)),   # fused QKV b
        pl.BlockSpec((1, H, H), lambda b, r: (r[b], 0, 0)),       # output proj
        pl.BlockSpec((1, 1, H), lambda b, r: (r[b], 0, 0)),
        pl.BlockSpec((1, 1, H), lambda b, r: (r[b], 0, 0)),       # attn LN gamma
        pl.BlockSpec((1, 1, H), lambda b, r: (r[b], 0, 0)),       # attn LN beta
    ]
    out_specs = (
        pl.BlockSpec((1, S, H), lambda b, r: (b, 0, 0)),          # att output
        pl.BlockSpec((1, 1, H), lambda b, r: (b, 0, 0)),          # seq mean
    )
    out_shape = (jax.ShapeDtypeStruct((B, S, H), x.dtype),
                 jax.ShapeDtypeStruct((B, 1, H), jnp.float32))

    kernel = functools.partial(switch_attention_kernel,
                               num_heads=num_heads, q_tile=q_tile, eps=eps)
    return pl.pallas_call(
        kernel,
        out_shape=out_shape,
        grid_spec=pltpu.PrefetchScalarGridSpec(
            num_scalar_prefetch=1,
            grid=(B,),
            in_specs=in_specs,
            out_specs=out_specs,
        ),
        compiler_params=pltpu.CompilerParams(
            dimension_semantics=("parallel",),
            vmem_limit_bytes=_vmem_limit(
                _attention_vmem_bytes(S, H, num_heads, q_tile)),
        ),
    )(route, x, mask3, prep["wqkv"], prep["bqkv"], prep["wo"], prep["bo"],
      prep["att_ln_g"], prep["att_ln_b"])


# ------------------------------ FFN kernel -----------------------------------
def switch_ffn_kernel(route_ref, a_ref, w1_ref, b1_ref, w2_ref, b2_ref,
                      ln_g_ref, ln_b_ref, out_ref, mean_ref, *, seq_len, eps):
    del route_ref
    a = a_ref[0]                                   # (ts, H) f32, also residual
    H = a.shape[1]
    h1 = jnp.dot(a.astype(jnp.bfloat16), w1_ref[0],
                 preferred_element_type=jnp.float32) + b1_ref[0]
    h1 = _gelu_tanh(h1)
    f = jnp.dot(h1.astype(jnp.bfloat16), w2_ref[0],
                preferred_element_type=jnp.float32) + b2_ref[0]
    # dropout: eval mode -> identity
    y = _layernorm(a + f, ln_g_ref[...], ln_b_ref[...], eps)
    out_ref[0] = y

    # Per-batch sequence mean, accumulated across the (arbitrary) seq-tile axis.
    @pl.when(pl.program_id(1) == 0)
    def _():
        mean_ref[0] = jnp.zeros((1, H), jnp.float32)
    mean_ref[0] += jnp.sum(y, axis=0, keepdims=True) * (1.0 / seq_len)


def _switch_ffn(att, route, prep, *, eps, seq_tile=None):
    B, S, H = att.shape
    inter = prep["w1"].shape[-1]
    if seq_tile is None:
        seq_tile = _pick_seq_tile(S, _ffn_seq_tile_target())
    ts = min(seq_tile, S)
    if S % ts != 0:
        ts = S
    ns = S // ts

    in_specs = [
        pl.BlockSpec((1, ts, H), lambda b, s, r: (b, s, 0)),       # att output
        pl.BlockSpec((1, H, inter), lambda b, s, r: (r[b], 0, 0)),
        pl.BlockSpec((1, 1, inter), lambda b, s, r: (r[b], 0, 0)),
        pl.BlockSpec((1, inter, H), lambda b, s, r: (r[b], 0, 0)),
        pl.BlockSpec((1, 1, H), lambda b, s, r: (r[b], 0, 0)),
        pl.BlockSpec((1, H), lambda b, s, r: (0, 0)),              # shared LN g
        pl.BlockSpec((1, H), lambda b, s, r: (0, 0)),              # shared LN b
    ]
    out_specs = (
        pl.BlockSpec((1, ts, H), lambda b, s, r: (b, s, 0)),       # layer output
        pl.BlockSpec((1, 1, H), lambda b, s, r: (b, 0, 0)),        # seq mean
    )
    out_shape = (jax.ShapeDtypeStruct((B, S, H), att.dtype),
                 jax.ShapeDtypeStruct((B, 1, H), jnp.float32))

    kernel = functools.partial(switch_ffn_kernel, seq_len=S, eps=eps)
    return pl.pallas_call(
        kernel,
        out_shape=out_shape,
        grid_spec=pltpu.PrefetchScalarGridSpec(
            num_scalar_prefetch=1,
            grid=(B, ns),
            in_specs=in_specs,
            out_specs=out_specs,
        ),
        compiler_params=pltpu.CompilerParams(
            dimension_semantics=("parallel", "arbitrary"),
            vmem_limit_bytes=_vmem_limit(_ffn_vmem_bytes(ts, H, inter)),
        ),
    )(route, att, prep["w1"], prep["b1"], prep["w2"], prep["b2"],
      prep["ln_g"], prep["ln_b"])


# ------------------------------- layer / model -------------------------------
def momo_layer(x, x_mean, mask3, prep, *, num_heads, eps=LAYER_NORM_EPS,
               attn_q_tile=None, ffn_seq_tile=None):
    # SwitchAttention routing (softmax is monotone -> argmax of logits;
    # jnp.argmax tie-break = first index, matching torch.max). The sequence
    # mean comes from the previous kernel (no extra HBM pass).
    att_logits = x_mean @ prep["att_sw_w"] + prep["att_sw_b"]
    att_route = jnp.argmax(att_logits, axis=-1).astype(jnp.int32)
    # route_prob_max / route_prob_max.detach() == 1.0 in the forward -> omitted.
    att_out, att_mean = _switch_attention(x, mask3, att_route, prep,
                                          num_heads=num_heads, eps=eps,
                                          q_tile=attn_q_tile)

    # SwitchFeedForward routing on the attention output's in-kernel mean.
    ffn_logits = att_mean[:, 0, :] @ prep["ffn_sw_w"] + prep["ffn_sw_b"]
    ffn_route = jnp.argmax(ffn_logits, axis=-1).astype(jnp.int32)
    out, out_mean = _switch_ffn(att_out, ffn_route, prep, eps=eps,
                                seq_tile=ffn_seq_tile)
    return out, out_mean[:, 0, :]


def prepare_layer_params(p, *, num_heads):
    """Fuse QKV, fold 1/sqrt(hd) into Q, cast matmul weights to bf16.

    Call ONCE per model (outside the jitted forward)."""
    bf = jnp.bfloat16
    H = p["wq"].shape[-1]
    hd = H // num_heads
    scale = 1.0 / math.sqrt(hd)
    wqkv = jnp.concatenate([p["wq"] * scale, p["wk"], p["wv"]], axis=-1)
    bqkv = jnp.concatenate([p["bq"] * scale, p["bk"], p["bv"]], axis=-1)
    return {
        "wqkv": wqkv.astype(bf), "bqkv": bqkv,
        "wo": p["wo"].astype(bf), "bo": p["bo"],
        "att_ln_g": p["att_ln_g"], "att_ln_b": p["att_ln_b"],
        "w1": p["w1"].astype(bf), "b1": p["b1"],
        "w2": p["w2"].astype(bf), "b2": p["b2"],
        "ln_g": p["ln_g"], "ln_b": p["ln_b"],
        "att_sw_w": p["att_sw_w"], "att_sw_b": p["att_sw_b"],
        "ffn_sw_w": p["ffn_sw_w"], "ffn_sw_b": p["ffn_sw_b"],
    }


def bert_momo_share(x, mask, prepared_layers, *, num_heads,
                    eps=LAYER_NORM_EPS, attn_q_tile=None, ffn_seq_tile=None):
    B, S = mask.shape
    mask3 = mask.reshape(B, 1, S).astype(jnp.float32)
    h = x
    h_mean = jnp.mean(x, axis=1)        # only the first layer reads this in JAX
    for prep in prepared_layers:
        h, h_mean = momo_layer(h, h_mean, mask3, prep, num_heads=num_heads,
                               eps=eps, attn_q_tile=attn_q_tile,
                               ffn_seq_tile=ffn_seq_tile)
    return h


# ----------------------------- parameters ------------------------------------
def init_layer_params(key, H, I, dtype=jnp.float32):
    keys = jax.random.split(key, 10)
    w = lambda k, shape, s=0.02: (s * jax.random.normal(k, shape)).astype(dtype)
    z = lambda shape: jnp.zeros(shape, dtype)
    o = lambda shape: jnp.ones(shape, dtype)
    return {
        "att_sw_w": w(keys[0], (H, 2), 0.5), "att_sw_b": z((1, 2)),
        "wq": w(keys[1], (2, H, H)),      "bq": w(keys[2], (2, 1, H)),
        "wk": w(keys[3], (2, H, H)),      "bk": z((2, 1, H)),
        "wv": w(keys[4], (2, H, H)),      "bv": z((2, 1, H)),
        "wo": w(keys[5], (2, H, H)),      "bo": z((2, 1, H)),
        "att_ln_g": o((2, 1, H)),         "att_ln_b": z((2, 1, H)),
        "ffn_sw_w": w(keys[6], (H, 2), 0.5), "ffn_sw_b": z((1, 2)),
        "w1": w(keys[7], (2, H, I)),      "b1": w(keys[8], (2, 1, I)),
        "w2": w(keys[9], (2, I, H)),      "b2": z((2, 1, H)),
        "ln_g": o((1, H)),                "ln_b": z((1, H)),
    }


# --------------------------- pure-JAX reference -------------------------------
def ref_layer(x, mask, p, *, num_heads, eps):
    B, S, H = x.shape
    hd = H // num_heads
    scale = 1.0 / math.sqrt(hd)
    bf, f32 = jnp.bfloat16, jnp.float32

    def mm(a, b):
        return jnp.matmul(a.astype(bf), b.astype(bf), preferred_element_type=f32)

    def attn_expert(e):
        q = mm(x, p["wq"][e]) + p["bq"][e]
        k = mm(x, p["wk"][e]) + p["bk"][e]
        v = mm(x, p["wv"][e]) + p["bv"][e]
        qh = q.reshape(B, S, num_heads, hd).transpose(0, 2, 1, 3)
        kh = k.reshape(B, S, num_heads, hd).transpose(0, 2, 1, 3)
        vh = v.reshape(B, S, num_heads, hd).transpose(0, 2, 1, 3)
        sc = jnp.einsum("bhqd,bhkd->bhqk", qh.astype(bf), kh.astype(bf),
                        preferred_element_type=f32) * scale
        sc = sc + mask[:, None, None, :]
        pr = jax.nn.softmax(sc, axis=-1)
        ctx = jnp.einsum("bhqk,bhkd->bhqd", pr.astype(bf), vh.astype(bf),
                         preferred_element_type=f32)
        ctx = ctx.transpose(0, 2, 1, 3).reshape(B, S, H)
        proj = mm(ctx, p["wo"][e]) + p["bo"][e]
        return _layernorm(proj + x, p["att_ln_g"][e], p["att_ln_b"][e], eps)

    logits = x.mean(1) @ p["att_sw_w"] + p["att_sw_b"]
    r0 = (jnp.argmax(logits, axis=-1) == 0)[:, None, None]
    att = jnp.where(r0, attn_expert(0), attn_expert(1))

    flog = att.mean(1) @ p["ffn_sw_w"] + p["ffn_sw_b"]
    fr0 = (jnp.argmax(flog, axis=-1) == 0)[:, None, None]

    def ffn_expert(e):
        h1 = _gelu_tanh(mm(att, p["w1"][e]) + p["b1"][e])
        return mm(h1, p["w2"][e]) + p["b2"][e]

    ffn = jnp.where(fr0, ffn_expert(0), ffn_expert(1))
    return _layernorm(att + ffn, p["ln_g"], p["ln_b"], eps)


# ---------------------------------- main --------------------------------------
if __name__ == "__main__":
    def run_case(B, S, H, NH, I, L, *, attn_q_tile=None, ffn_seq_tile=None,
                 seed=0):
        key = jax.random.PRNGKey(seed)
        kx, kp = jax.random.split(key)
        x = jax.random.normal(kx, (B, S, H), jnp.float32)
        mask = jnp.zeros((B, S), jnp.float32).at[1, S - 1].set(-1e9)
        layer_params = [init_layer_params(jax.random.fold_in(kp, i), H, I)
                        for i in range(L)]
        # Weight prep (QKV fusion, scale folding, bf16 cast) done ONCE, outside jit.
        prepared = [prepare_layer_params(p, num_heads=NH) for p in layer_params]

        fwd = jax.jit(functools.partial(
            bert_momo_share, num_heads=NH,
            attn_q_tile=attn_q_tile, ffn_seq_tile=ffn_seq_tile))
        out = jax.block_until_ready(fwd(x, mask, prepared))

        ref = x
        for p in layer_params:
            ref = ref_layer(ref, mask, p, num_heads=NH, eps=LAYER_NORM_EPS)
        ref = jax.block_until_ready(ref)

        assert out.shape == (B, S, H)
        if not bool(jnp.allclose(out, ref, atol=2e-2, rtol=2e-2)):
            raise AssertionError(
                "mismatch vs reference, max abs err "
                f"{float(jnp.max(jnp.abs(out - ref)))}")

    # Default (single query-tile / single seq-tile) path.
    run_case(B=2, S=8, H=32, NH=2, I=64, L=2, seed=0)
    # Exercise the flash-style query tiling, the FFN sequence tiling and the
    # in-kernel mean accumulation across seq tiles with forced small tiles.
    run_case(B=2, S=16, H=32, NH=2, I=64, L=1,
             attn_q_tile=8, ffn_seq_tile=8, seed=1)

    print("KERNEL_OK")
</pallas_src>

<mosaic_0001>
module attributes {stable_mosaic.version = 11 : i64} {
  func.func @switch_attention_kernel(%arg0: i32, %arg1: memref<2xi32, #tpu.memory_space<smem>>, %arg2: memref<1x8x32xf32, #tpu.memory_space<vmem>>, %arg3: memref<1x1x8xf32, #tpu.memory_space<vmem>>, %arg4: memref<1x32x96xbf16, #tpu.memory_space<vmem>>, %arg5: memref<1x1x96xf32, #tpu.memory_space<vmem>>, %arg6: memref<1x32x32xbf16, #tpu.memory_space<vmem>>, %arg7: memref<1x1x32xf32, #tpu.memory_space<vmem>>, %arg8: memref<1x1x32xf32, #tpu.memory_space<vmem>>, %arg9: memref<1x1x32xf32, #tpu.memory_space<vmem>>, %arg10: memref<1x8x32xf32, #tpu.memory_space<vmem>>, %arg11: memref<1x1x32xf32, #tpu.memory_space<vmem>>) attributes {dimension_semantics = [#tpu.dimension_semantics<parallel>], iteration_bounds = array<i64: 2>, scalar_prefetch = 1 : i64, scratch_operands = 0 : i64, tpu.core_type = #tpu.core_type<tc>, window_params = [{transform_indices = @transform_0, window_bounds = array<i64: 1, 8, 32>}, {transform_indices = @transform_1, window_bounds = array<i64: 1, 1, 8>}, {transform_indices = @transform_2, window_bounds = array<i64: 1, 32, 96>}, {transform_indices = @transform_3, window_bounds = array<i64: 1, 1, 96>}, {transform_indices = @transform_4, window_bounds = array<i64: 1, 32, 32>}, {transform_indices = @transform_5, window_bounds = array<i64: 1, 1, 32>}, {transform_indices = @transform_6, window_bounds = array<i64: 1, 1, 32>}, {transform_indices = @transform_7, window_bounds = array<i64: 1, 1, 32>}, {transform_indices = @transform_8, window_bounds = array<i64: 1, 8, 32>}, {transform_indices = @transform_9, window_bounds = array<i64: 1, 1, 32>}]} {
    %c0 = arith.constant 0 : index
    %c0_0 = arith.constant 0 : index
    %c0_1 = arith.constant 0 : index
    %0 = vector.load %arg2[%c0, %c0_0, %c0_1] : memref<1x8x32xf32, #tpu.memory_space<vmem>>, vector<1x8x32xf32>
    %1 = vector.shape_cast %0 : vector<1x8x32xf32> to vector<8x32xf32>
    %2 = arith.truncf %1 : vector<8x32xf32> to vector<8x32xbf16>
    %c0_2 = arith.constant 0 : index
    %c0_3 = arith.constant 0 : index
    %c32 = arith.constant 32 : index
    %3 = vector.load %arg4[%c0_2, %c0_3, %c32] : memref<1x32x96xbf16, #tpu.memory_space<vmem>>, vector<1x32x64xbf16>
    %4 = vector.shape_cast %3 : vector<1x32x64xbf16> to vector<32x64xbf16>
    %cst = arith.constant dense<0.000000e+00> : vector<8x64xf32>
    %5 = tpu.matmul %2, %4, %cst {dimension_numbers = #tpu.dot_dimension_numbers<[1], [0], [0], [1], [0, 0, 1, 1], [], []>} : vector<8x32xbf16>, vector<32x64xbf16>, vector<8x64xf32> -> vector<8x64xf32>
    %c0_4 = arith.constant 0 : index
    %c0_5 = arith.constant 0 : index
    %c32_6 = arith.constant 32 : index
    %6 = vector.load %arg5[%c0_4, %c0_5, %c32_6] : memref<1x1x96xf32, #tpu.memory_space<vmem>>, vector<1x1x64xf32>
    %7 = vector.shape_cast %6 : vector<1x1x64xf32> to vector<1x64xf32>
    %8 = vector.broadcast %7 : vector<1x64xf32> to vector<8x64xf32>
    %9 = arith.addf %5, %8 : vector<8x64xf32>
    %10 = vector.extract_strided_slice %9 {offsets = [0, 0], sizes = [8, 32], strides = [1, 1]} : vector<8x64xf32> to vector<8x32xf32>
    %11 = vector.extract_strided_slice %10 {offsets = [0, 0], sizes = [8, 16], strides = [1, 1]} : vector<8x32xf32> to vector<8x16xf32>
    %12 = vector.extract_strided_slice %10 {offsets = [0, 16], sizes = [8, 16], strides = [1, 1]} : vector<8x32xf32> to vector<8x16xf32>
    %13 = vector.shape_cast %11 : vector<8x16xf32> to vector<1x8x16xf32>
    %14 = vector.shape_cast %12 : vector<8x16xf32> to vector<1x8x16xf32>
    %15 = tpu.concatenate %13, %14 in 0 : vector<1x8x16xf32>, vector<1x8x16xf32> -> vector<2x8x16xf32>
    %16 = arith.truncf %15 : vector<2x8x16xf32> to vector<2x8x16xbf16>
    %17 = vector.extract_strided_slice %9 {offsets = [0, 32], sizes = [8, 32], strides = [1, 1]} : vector<8x64xf32> to vector<8x32xf32>
    %18 = vector.extract_strided_slice %17 {offsets = [0, 0], sizes = [8, 16], strides = [1, 1]} : vector<8x32xf32> to vector<8x16xf32>
    %19 = vector.extract_strided_slice %17 {offsets = [0, 16], sizes = [8, 16], strides = [1, 1]} : vector<8x32xf32> to vector<8x16xf32>
    %20 = vector.shape_cast %18 : vector<8x16xf32> to vector<1x8x16xf32>
    %21 = vector.shape_cast %19 : vector<8x16xf32> to vector<1x8x16xf32>
    %22 = tpu.concatenate %20, %21 in 0 : vector<1x8x16xf32>, vector<1x8x16xf32> -> vector<2x8x16xf32>
    %23 = arith.truncf %22 : vector<2x8x16xf32> to vector<2x8x16xbf16>
    %c0_7 = arith.constant 0 : index
    %c0_8 = arith.constant 0 : index
    %c0_9 = arith.constant 0 : index
    %24 = vector.load %arg3[%c0_7, %c0_8, %c0_9] : memref<1x1x8xf32, #tpu.memory_space<vmem>>, vector<1x1x8xf32>
    %25 = vector.shape_cast %24 : vector<1x1x8xf32> to vector<1x8xf32>
    %c0_10 = arith.constant 0 : index
    %c0_11 = arith.constant 0 : index
    %c0_12 = arith.constant 0 : index
    %26 = vector.load %arg8[%c0_10, %c0_11, %c0_12] : memref<1x1x32xf32, #tpu.memory_space<vmem>>, vector<1x1x32xf32>
    %27 = vector.shape_cast %26 : vector<1x1x32xf32> to vector<1x32xf32>
    %c0_13 = arith.constant 0 : index
    %c0_14 = arith.constant 0 : index
    %c0_15 = arith.constant 0 : index
    %28 = vector.load %arg9[%c0_13, %c0_14, %c0_15] : memref<1x1x32xf32, #tpu.memory_space<vmem>>, vector<1x1x32xf32>
    %29 = vector.shape_cast %28 : vector<1x1x32xf32> to vector<1x32xf32>
    %cst_16 = arith.constant 0.000000e+00 : f32
    %30 = vector.broadcast %cst_16 : f32 to vector<1x32xf32>
    %c0_17 = arith.constant 0 : index
    %c0_18 = arith.constant 0 : index
    %c0_19 = arith.constant 0 : index
    %31 = vector.load %arg11[%c0_17, %c0_18, %c0_19] : memref<1x1x32xf32, #tpu.memory_space<vmem>>, vector<1x1x32xf32>
    %32 = vector.shape_cast %31 : vector<1x1x32xf32> to vector<1x32xf32>
    %33 = vector.shape_cast %30 : vector<1x32xf32> to vector<1x1x32xf32>
    tpu.vector_store %arg11[%c0_17, %c0_18, %c0_19], %33 {strides = array<i32>} : memref<1x1x32xf32, #tpu.memory_space<vmem>>, vector<1x1x32xf32>,
    %c0_20 = arith.constant 0 : index
    %c0_21 = arith.constant 0 : index
    %c0_22 = arith.constant 0 : index
    %34 = vector.load %arg2[%c0_20, %c0_21, %c0_22] : memref<1x8x32xf32, #tpu.memory_space<vmem>>, vector<1x8x32xf32>
    %35 = vector.shape_cast %34 : vector<1x8x32xf32> to vector<8x32xf32>
    %36 = arith.truncf %35 : vector<8x32xf32> to vector<8x32xbf16>
    %c0_23 = arith.constant 0 : index
    %c0_24 = arith.constant 0 : index
    %c0_25 = arith.constant 0 : index
    %37 = vector.load %arg4[%c0_23, %c0_24, %c0_25] : memref<1x32x96xbf16, #tpu.memory_space<vmem>>, vector<1x32x32xbf16>
    %38 = vector.shape_cast %37 : vector<1x32x32xbf16> to vector<32x32xbf16>
    %cst_26 = arith.constant dense<0.000000e+00> : vector<8x32xf32>
    %39 = tpu.matmul %36, %38, %cst_26 {dimension_numbers = #tpu.dot_dimension_numbers<[1], [0], [0], [1], [0, 0, 1, 1], [], []>} : vector<8x32xbf16>, vector<32x32xbf16>, vector<8x32xf32> -> vector<8x32xf32>
    %c0_27 = arith.constant 0 : index
    %c0_28 = arith.constant 0 : index
    %c0_29 = arith.constant 0 : index
    %40 = vector.load %arg5[%c0_27, %c0_28, %c0_29] : memref<1x1x96xf32, #tpu.memory_space<vmem>>, vector<1x1x32xf32>
    %41 = vector.shape_cast %40 : vector<1x1x32xf32> to vector<1x32xf32>
    %42 = vector.broadcast %41 : vector<1x32xf32> to vector<8x32xf32>
    %43 = arith.addf %39, %42 : vector<8x32xf32>
    %44 = vector.extract_strided_slice %43 {offsets = [0, 0], sizes = [8, 16], strides = [1, 1]} : vector<8x32xf32> to vector<8x16xf32>
    %45 = vector.extract_strided_slice %43 {offsets = [0, 16], sizes = [8, 16], strides = [1, 1]} : vector<8x32xf32> to vector<8x16xf32>
    %46 = vector.shape_cast %44 : vector<8x16xf32> to vector<1x8x16xf32>
    %47 = vector.shape_cast %45 : vector<8x16xf32> to vector<1x8x16xf32>
    %48 = tpu.concatenate %46, %47 in 0 : vector<1x8x16xf32>, vector<1x8x16xf32> -> vector<2x8x16xf32>
    %49 = arith.truncf %48 : vector<2x8x16xf32> to vector<2x8x16xbf16>
    "tpu.trace_start"() <{level = 10 : i32, message = "hqd,hkd->hqk"}> : () -> ()
    %cst_30 = arith.constant dense<0.000000e+00> : vector<2x8x8xf32>
    %50 = tpu.matmul %49, %16, %cst_30 {dimension_numbers = #tpu.dot_dimension_numbers<[2], [2], [1], [1], [0, 0, 0, 1, 1, 1], [0], [0]>} : vector<2x8x16xbf16>, vector<2x8x16xbf16>, vector<2x8x8xf32> -> vector<2x8x8xf32>
    "tpu.trace_stop"() : () -> ()
    %51 = vector.shape_cast %25 : vector<1x8xf32> to vector<1x1x8xf32>
    %52 = vector.broadcast %51 : vector<1x1x8xf32> to vector<2x8x8xf32>
    %53 = arith.addf %50, %52 : vector<2x8x8xf32>
    %cst_31 = arith.constant dense<0xFF800000> : vector<2x8xf32>
    %54 = vector.multi_reduction <maximumf>, %53, %cst_31 [2] : vector<2x8x8xf32> to vector<2x8xf32>
    %55 = vector.shape_cast %54 : vector<2x8xf32> to vector<2x8x1xf32>
    %56 = vector.broadcast %55 : vector<2x8x1xf32> to vector<2x8x8xf32>
    %57 = arith.subf %53, %56 : vector<2x8x8xf32>
    %58 = math.exp %57 : vector<2x8x8xf32>
    %cst_32 = arith.constant dense<0.000000e+00> : vector<2x8xf32>
    %59 = vector.multi_reduction <add>, %58, %cst_32 [2] : vector<2x8x8xf32> to vector<2x8xf32>
    %60 = vector.shape_cast %59 : vector<2x8xf32> to vector<2x8x1xf32>
    %61 = arith.truncf %58 : vector<2x8x8xf32> to vector<2x8x8xbf16>
    "tpu.trace_start"() <{level = 10 : i32, message = "hqk,hkd->hqd"}> : () -> ()
    %cst_33 = arith.constant dense<0.000000e+00> : vector<2x8x16xf32>
    %62 = tpu.matmul %61, %23, %cst_33 {dimension_numbers = #tpu.dot_dimension_numbers<[2], [1], [1], [2], [0, 0, 0, 1, 1, 2], [0], [0]>} : vector<2x8x8xbf16>, vector<2x8x16xbf16>, vector<2x8x16xf32> -> vector<2x8x16xf32>
    "tpu.trace_stop"() : () -> ()
    %63 = tpu.reciprocal %60 {approx = true} : vector<2x8x1xf32> -> vector<2x8x1xf32>
    %64 = vector.broadcast %63 : vector<2x8x1xf32> to vector<2x8x16xf32>
    %65 = arith.mulf %62, %64 : vector<2x8x16xf32>
    %66 = vector.extract_strided_slice %65 {offsets = [0, 0, 0], sizes = [1, 8, 16], strides = [1, 1, 1]} : vector<2x8x16xf32> to vector<1x8x16xf32>
    %67 = vector.shape_cast %66 : vector<1x8x16xf32> to vector<8x16xf32>
    %68 = vector.extract_strided_slice %65 {offsets = [1, 0, 0], sizes = [1, 8, 16], strides = [1, 1, 1]} : vector<2x8x16xf32> to vector<1x8x16xf32>
    %69 = vector.shape_cast %68 : vector<1x8x16xf32> to vector<8x16xf32>
    %70 = tpu.concatenate %67, %69 in 1 : vector<8x16xf32>, vector<8x16xf32> -> vector<8x32xf32>
    %71 = arith.truncf %70 : vector<8x32xf32> to vector<8x32xbf16>
    %c0_34 = arith.constant 0 : index
    %c0_35 = arith.constant 0 : index
    %c0_36 = arith.constant 0 : index
    %72 = vector.load %arg6[%c0_34, %c0_35, %c0_36] : memref<1x32x32xbf16, #tpu.memory_space<vmem>>, vector<1x32x32xbf16>
    %73 = vector.shape_cast %72 : vector<1x32x32xbf16> to vector<32x32xbf16>
    %cst_37 = arith.constant dense<0.000000e+00> : vector<8x32xf32>
    %74 = tpu.matmul %71, %73, %cst_37 {dimension_numbers = #tpu.dot_dimension_numbers<[1], [0], [0], [1], [0, 0, 1, 1], [], []>} : vector<8x32xbf16>, vector<32x32xbf16>, vector<8x32xf32> -> vector<8x32xf32>
    %c0_38 = arith.constant 0 : index
    %c0_39 = arith.constant 0 : index
    %c0_40 = arith.constant 0 : index
    %75 = vector.load %arg7[%c0_38, %c0_39, %c0_40] : memref<1x1x32xf32, #tpu.memory_space<vmem>>, vector<1x1x32xf32>
    %76 = vector.shape_cast %75 : vector<1x1x32xf32> to vector<1x32xf32>
    %77 = vector.broadcast %76 : vector<1x32xf32> to vector<8x32xf32>
    %78 = arith.addf %74, %77 : vector<8x32xf32>
    %79 = arith.addf %78, %35 : vector<8x32xf32>
    %cst_41 = arith.constant dense<0.000000e+00> : vector<8xf32>
    %80 = vector.multi_reduction <add>, %79, %cst_41 [1] : vector<8x32xf32> to vector<8xf32>
    %81 = vector.shape_cast %80 : vector<8xf32> to vector<8x1xf32>
    %cst_42 = arith.constant 3.200000e+01 : f32
    %82 = vector.broadcast %cst_42 : f32 to vector<8x1xf32>
    %83 = arith.divf %81, %82 : vector<8x1xf32>
    %84 = vector.broadcast %83 : vector<8x1xf32> to vector<8x32xf32>
    %85 = arith.subf %79, %84 : vector<8x32xf32>
    %86 = arith.mulf %85, %85 : vector<8x32xf32>
    %cst_43 = arith.constant dense<0.000000e+00> : vector<8xf32>
    %87 = vector.multi_reduction <add>, %86, %cst_43 [1] : vector<8x32xf32> to vector<8xf32>
    %88 = vector.shape_cast %87 : vector<8xf32> to vector<8x1xf32>
    %cst_44 = arith.constant 3.200000e+01 : f32
    %89 = vector.broadcast %cst_44 : f32 to vector<8x1xf32>
    %90 = arith.divf %88, %89 : vector<8x1xf32>
    %91 = vector.broadcast %83 : vector<8x1xf32> to vector<8x32xf32>
    %92 = arith.subf %79, %91 : vector<8x32xf32>
    %cst_45 = arith.constant 9.99999996E-13 : f32
    %93 = vector.broadcast %cst_45 : f32 to vector<8x1xf32>
    %94 = arith.addf %90, %93 : vector<8x1xf32>
    %95 = math.rsqrt %94 : vector<8x1xf32>
    %96 = vector.broadcast %95 : vector<8x1xf32> to vector<8x32xf32>
    %97 = arith.mulf %92, %96 : vector<8x32xf32>
    %98 = vector.broadcast %27 : vector<1x32xf32> to vector<8x32xf32>
    %99 = arith.mulf %97, %98 : vector<8x32xf32>
    %100 = vector.broadcast %29 : vector<1x32xf32> to vector<8x32xf32>
    %101 = arith.addf %99, %100 : vector<8x32xf32>
    %c0_46 = arith.constant 0 : index
    %c0_47 = arith.constant 0 : index
    %c0_48 = arith.constant 0 : index
    %102 = vector.load %arg10[%c0_46, %c0_47, %c0_48] : memref<1x8x32xf32, #tpu.memory_space<vmem>>, vector<1x8x32xf32>
    %103 = vector.shape_cast %102 : vector<1x8x32xf32> to vector<8x32xf32>
    %104 = vector.shape_cast %101 : vector<8x32xf32> to vector<1x8x32xf32>
    tpu.vector_store %arg10[%c0_46, %c0_47, %c0_48], %104 {strides = array<i32>} : memref<1x8x32xf32, #tpu.memory_space<vmem>>, vector<1x8x32xf32>,
    %c0_49 = arith.constant 0 : index
    %c0_50 = arith.constant 0 : index
    %c0_51 = arith.constant 0 : index
    %105 = vector.load %arg11[%c0_49, %c0_50, %c0_51] : memref<1x1x32xf32, #tpu.memory_space<vmem>>, vector<1x1x32xf32>
    %106 = vector.shape_cast %105 : vector<1x1x32xf32> to vector<1x32xf32>
    %cst_52 = arith.constant dense<0.000000e+00> : vector<32xf32>
    %107 = vector.multi_reduction <add>, %101, %cst_52 [0] : vector<8x32xf32> to vector<32xf32>
    %108 = vector.shape_cast %107 : vector<32xf32> to vector<1x32xf32>
    %cst_53 = arith.constant 1.250000e-01 : f32
    %109 = vector.broadcast %cst_53 : f32 to vector<1x32xf32>
    %110 = arith.mulf %108, %109 : vector<1x32xf32>
    %111 = arith.addf %106, %110 : vector<1x32xf32>
    %c0_54 = arith.constant 0 : index
    %c0_55 = arith.constant 0 : index
    %c0_56 = arith.constant 0 : index
    %112 = vector.load %arg11[%c0_54, %c0_55, %c0_56] : memref<1x1x32xf32, #tpu.memory_space<vmem>>, vector<1x1x32xf32>
    %113 = vector.shape_cast %112 : vector<1x1x32xf32> to vector<1x32xf32>
    %114 = vector.shape_cast %111 : vector<1x32xf32> to vector<1x1x32xf32>
    tpu.vector_store %arg11[%c0_54, %c0_55, %c0_56], %114 {strides = array<i32>} : memref<1x1x32xf32, #tpu.memory_space<vmem>>, vector<1x1x32xf32>,
    return
  }
  func.func @transform_0(%arg0: i32, %arg1: memref<2xi32, #tpu.memory_space<smem>>) -> (i32, i32, i32) {
    %c0_i32 = arith.constant 0 : i32
    %c0_i32_0 = arith.constant 0 : i32
    %c0_i32_1 = arith.constant 0 : i32
    return %arg0, %c0_i32, %c0_i32_0 : i32, i32, i32
  }
  func.func @transform_1(%arg0: i32, %arg1: memref<2xi32, #tpu.memory_space<smem>>) -> (i32, i32, i32) {
    %c0_i32 = arith.constant 0 : i32
    %c0_i32_0 = arith.constant 0 : i32
    %c0_i32_1 = arith.constant 0 : i32
    return %arg0, %c0_i32, %c0_i32_0 : i32, i32, i32
  }
  func.func @transform_2(%arg0: i32, %arg1: memref<2xi32, #tpu.memory_space<smem>>) -> (i32, i32, i32) {
    %0 = arith.index_cast %arg0 : i32 to index
    %1 = memref.load %arg1[%0] : memref<2xi32, #tpu.memory_space<smem>>
    %c0_i32 = arith.constant 0 : i32
    %c0_i32_0 = arith.constant 0 : i32
    %c0_i32_1 = arith.constant 0 : i32
    return %1, %c0_i32, %c0_i32_0 : i32, i32, i32
  }
  func.func @transform_3(%arg0: i32, %arg1: memref<2xi32, #tpu.memory_space<smem>>) -> (i32, i32, i32) {
    %0 = arith.index_cast %arg0 : i32 to index
    %1 = memref.load %arg1[%0] : memref<2xi32, #tpu.memory_space<smem>>
    %c0_i32 = arith.constant 0 : i32
    %c0_i32_0 = arith.constant 0 : i32
    %c0_i32_1 = arith.constant 0 : i32
    return %1, %c0_i32, %c0_i32_0 : i32, i32, i32
  }
  func.func @transform_4(%arg0: i32, %arg1: memref<2xi32, #tpu.memory_space<smem>>) -> (i32, i32, i32) {
    %0 = arith.index_cast %arg0 : i32 to index
    %1 = memref.load %arg1[%0] : memref<2xi32, #tpu.memory_space<smem>>
    %c0_i32 = arith.constant 0 : i32
    %c0_i32_0 = arith.constant 0 : i32
    %c0_i32_1 = arith.constant 0 : i32
    return %1, %c0_i32, %c0_i32_0 : i32, i32, i32
  }
  func.func @transform_5(%arg0: i32, %arg1: memref<2xi32, #tpu.memory_space<smem>>) -> (i32, i32, i32) {
    %0 = arith.index_cast %arg0 : i32 to index
    %1 = memref.load %arg1[%0] : memref<2xi32, #tpu.memory_space<smem>>
    %c0_i32 = arith.constant 0 : i32
    %c0_i32_0 = arith.constant 0 : i32
    %c0_i32_1 = arith.constant 0 : i32
    return %1, %c0_i32, %c0_i32_0 : i32, i32, i32
  }
  func.func @transform_6(%arg0: i32, %arg1: memref<2xi32, #tpu.memory_space<smem>>) -> (i32, i32, i32) {
    %0 = arith.index_cast %arg0 : i32 to index
    %1 = memref.load %arg1[%0] : memref<2xi32, #tpu.memory_space<smem>>
    %c0_i32 = arith.constant 0 : i32
    %c0_i32_0 = arith.constant 0 : i32
    %c0_i32_1 = arith.constant 0 : i32
    return %1, %c0_i32, %c0_i32_0 : i32, i32, i32
  }
  func.func @transform_7(%arg0: i32, %arg1: memref<2xi32, #tpu.memory_space<smem>>) -> (i32, i32, i32) {
    %0 = arith.index_cast %arg0 : i32 to index
    %1 = memref.load %arg1[%0] : memref<2xi32, #tpu.memory_space<smem>>
    %c0_i32 = arith.constant 0 : i32
    %c0_i32_0 = arith.constant 0 : i32
    %c0_i32_1 = arith.constant 0 : i32
    return %1, %c0_i32, %c0_i32_0 : i32, i32, i32
  }
  func.func @transform_8(%arg0: i32, %arg1: memref<2xi32, #tpu.memory_space<smem>>) -> (i32, i32, i32) {
    %c0_i32 = arith.constant 0 : i32
    %c0_i32_0 = arith.constant 0 : i32
    %c0_i32_1 = arith.constant 0 : i32
    return %arg0, %c0_i32, %c0_i32_0 : i32, i32, i32
  }
  func.func @transform_9(%arg0: i32, %arg1: memref<2xi32, #tpu.memory_space<smem>>) -> (i32, i32, i32) {
    %c0_i32 = arith.constant 0 : i32
    %c0_i32_0 = arith.constant 0 : i32
    %c0_i32_1 = arith.constant 0 : i32
    return %arg0, %c0_i32, %c0_i32_0 : i32, i32, i32
  }
}

module attributes {stable_mosaic.version = 11 : i64} {
  func.func @switch_ffn_kernel(%arg0: i32, %arg1: i32, %arg2: memref<2xi32, #tpu.memory_space<smem>>, %arg3: memref<1x8x32xf32, #tpu.memory_space<vmem>>, %arg4: memref<1x32x64xbf16, #tpu.memory_space<vmem>>, %arg5: memref<1x1x64xf32, #tpu.memory_space<vmem>>, %arg6: memref<1x64x32xbf16, #tpu.memory_space<vmem>>, %arg7: memref<1x1x32xf32, #tpu.memory_space<vmem>>, %arg8: memref<1x32xf32, #tpu.memory_space<vmem>>, %arg9: memref<1x32xf32, #tpu.memory_space<vmem>>, %arg10: memref<1x8x32xf32, #tpu.memory_space<vmem>>, %arg11: memref<1x1x32xf32, #tpu.memory_space<vmem>>) attributes {dimension_semantics = [#tpu.dimension_semantics<parallel>, #tpu.dimension_semantics<arbitrary>], iteration_bounds = array<i64: 2, 1>, scalar_prefetch = 1 : i64, scratch_operands = 0 : i64, tpu.core_type = #tpu.core_type<tc>, window_params = [{transform_indices = @transform_0, window_bounds = array<i64: 1, 8, 32>}, {transform_indices = @transform_1, window_bounds = array<i64: 1, 32, 64>}, {transform_indices = @transform_2, window_bounds = array<i64: 1, 1, 64>}, {transform_indices = @transform_3, window_bounds = array<i64: 1, 64, 32>}, {transform_indices = @transform_4, window_bounds = array<i64: 1, 1, 32>}, {pipeline_mode = #tpu.pipeline_mode<synchronous>, transform_indices = @transform_5, window_bounds = array<i64: 1, 32>}, {pipeline_mode = #tpu.pipeline_mode<synchronous>, transform_indices = @transform_6, window_bounds = array<i64: 1, 32>}, {transform_indices = @transform_7, window_bounds = array<i64: 1, 8, 32>}, {transform_indices = @transform_8, window_bounds = array<i64: 1, 1, 32>}]} {
    %c0 = arith.constant 0 : index
    %c0_0 = arith.constant 0 : index
    %c0_1 = arith.constant 0 : index
    %0 = vector.load %arg3[%c0, %c0_0, %c0_1] : memref<1x8x32xf32, #tpu.memory_space<vmem>>, vector<1x8x32xf32>
    %1 = vector.shape_cast %0 : vector<1x8x32xf32> to vector<8x32xf32>
    %2 = arith.truncf %1 : vector<8x32xf32> to vector<8x32xbf16>
    %c0_2 = arith.constant 0 : index
    %c0_3 = arith.constant 0 : index
    %c0_4 = arith.constant 0 : index
    %3 = vector.load %arg4[%c0_2, %c0_3, %c0_4] : memref<1x32x64xbf16, #tpu.memory_space<vmem>>, vector<1x32x64xbf16>
    %4 = vector.shape_cast %3 : vector<1x32x64xbf16> to vector<32x64xbf16>
    %cst = arith.constant dense<0.000000e+00> : vector<8x64xf32>
    %5 = tpu.matmul %2, %4, %cst {dimension_numbers = #tpu.dot_dimension_numbers<[1], [0], [0], [1], [0, 0, 1, 1], [], []>} : vector<8x32xbf16>, vector<32x64xbf16>, vector<8x64xf32> -> vector<8x64xf32>
    %c0_5 = arith.constant 0 : index
    %c0_6 = arith.constant 0 : index
    %c0_7 = arith.constant 0 : index
    %6 = vector.load %arg5[%c0_5, %c0_6, %c0_7] : memref<1x1x64xf32, #tpu.memory_space<vmem>>, vector<1x1x64xf32>
    %7 = vector.shape_cast %6 : vector<1x1x64xf32> to vector<1x64xf32>
    %8 = vector.broadcast %7 : vector<1x64xf32> to vector<8x64xf32>
    %9 = arith.addf %5, %8 : vector<8x64xf32>
    %cst_8 = arith.constant 5.000000e-01 : f32
    %10 = vector.broadcast %cst_8 : f32 to vector<8x64xf32>
    %11 = arith.mulf %10, %9 : vector<8x64xf32>
    %cst_9 = arith.constant 4.471500e-02 : f32
    %12 = vector.broadcast %cst_9 : f32 to vector<8x64xf32>
    %13 = arith.mulf %12, %9 : vector<8x64xf32>
    %14 = arith.mulf %13, %9 : vector<8x64xf32>
    %15 = arith.mulf %14, %9 : vector<8x64xf32>
    %16 = arith.addf %9, %15 : vector<8x64xf32>
    %cst_10 = arith.constant 0.797884583 : f32
    %17 = vector.broadcast %cst_10 : f32 to vector<8x64xf32>
    %18 = arith.mulf %17, %16 : vector<8x64xf32>
    %19 = math.tanh %18 : vector<8x64xf32>
    %cst_11 = arith.constant 1.000000e+00 : f32
    %20 = vector.broadcast %cst_11 : f32 to vector<8x64xf32>
    %21 = arith.addf %20, %19 : vector<8x64xf32>
    %22 = arith.mulf %11, %21 : vector<8x64xf32>
    %23 = arith.truncf %22 : vector<8x64xf32> to vector<8x64xbf16>
    %c0_12 = arith.constant 0 : index
    %c0_13 = arith.constant 0 : index
    %c0_14 = arith.constant 0 : index
    %24 = vector.load %arg6[%c0_12, %c0_13, %c0_14] : memref<1x64x32xbf16, #tpu.memory_space<vmem>>, vector<1x64x32xbf16>
    %25 = vector.shape_cast %24 : vector<1x64x32xbf16> to vector<64x32xbf16>
    %cst_15 = arith.constant dense<0.000000e+00> : vector<8x32xf32>
    %26 = tpu.matmul %23, %25, %cst_15 {dimension_numbers = #tpu.dot_dimension_numbers<[1], [0], [0], [1], [0, 0, 1, 1], [], []>} : vector<8x64xbf16>, vector<64x32xbf16>, vector<8x32xf32> -> vector<8x32xf32>
    %c0_16 = arith.constant 0 : index
    %c0_17 = arith.constant 0 : index
    %c0_18 = arith.constant 0 : index
    %27 = vector.load %arg7[%c0_16, %c0_17, %c0_18] : memref<1x1x32xf32, #tpu.memory_space<vmem>>, vector<1x1x32xf32>
    %28 = vector.shape_cast %27 : vector<1x1x32xf32> to vector<1x32xf32>
    %29 = vector.broadcast %28 : vector<1x32xf32> to vector<8x32xf32>
    %30 = arith.addf %26, %29 : vector<8x32xf32>
    %31 = arith.addf %1, %30 : vector<8x32xf32>
    %c0_19 = arith.constant 0 : index
    %c0_20 = arith.constant 0 : index
    %32 = vector.load %arg8[%c0_19, %c0_20] : memref<1x32xf32, #tpu.memory_space<vmem>>, vector<1x32xf32>
    %c0_21 = arith.constant 0 : index
    %c0_22 = arith.constant 0 : index
    %33 = vector.load %arg9[%c0_21, %c0_22] : memref<1x32xf32, #tpu.memory_space<vmem>>, vector<1x32xf32>
    %cst_23 = arith.constant dense<0.000000e+00> : vector<8xf32>
    %34 = vector.multi_reduction <add>, %31, %cst_23 [1] : vector<8x32xf32> to vector<8xf32>
    %35 = vector.shape_cast %34 : vector<8xf32> to vector<8x1xf32>
    %cst_24 = arith.constant 3.200000e+01 : f32
    %36 = vector.broadcast %cst_24 : f32 to vector<8x1xf32>
    %37 = arith.divf %35, %36 : vector<8x1xf32>
    %38 = vector.broadcast %37 : vector<8x1xf32> to vector<8x32xf32>
    %39 = arith.subf %31, %38 : vector<8x32xf32>
    %40 = arith.mulf %39, %39 : vector<8x32xf32>
    %cst_25 = arith.constant dense<0.000000e+00> : vector<8xf32>
    %41 = vector.multi_reduction <add>, %40, %cst_25 [1] : vector<8x32xf32> to vector<8xf32>
    %42 = vector.shape_cast %41 : vector<8xf32> to vector<8x1xf32>
    %cst_26 = arith.constant 3.200000e+01 : f32
    %43 = vector.broadcast %cst_26 : f32 to vector<8x1xf32>
    %44 = arith.divf %42, %43 : vector<8x1xf32>
    %45 = vector.broadcast %37 : vector<8x1xf32> to vector<8x32xf32>
    %46 = arith.subf %31, %45 : vector<8x32xf32>
    %cst_27 = arith.constant 9.99999996E-13 : f32
    %47 = vector.broadcast %cst_27 : f32 to vector<8x1xf32>
    %48 = arith.addf %44, %47 : vector<8x1xf32>
    %49 = math.rsqrt %48 : vector<8x1xf32>
    %50 = vector.broadcast %49 : vector<8x1xf32> to vector<8x32xf32>
    %51 = arith.mulf %46, %50 : vector<8x32xf32>
    %52 = vector.broadcast %32 : vector<1x32xf32> to vector<8x32xf32>
    %53 = arith.mulf %51, %52 : vector<8x32xf32>
    %54 = vector.broadcast %33 : vector<1x32xf32> to vector<8x32xf32>
    %55 = arith.addf %53, %54 : vector<8x32xf32>
    %c0_28 = arith.constant 0 : index
    %c0_29 = arith.constant 0 : index
    %c0_30 = arith.constant 0 : index
    %56 = vector.load %arg10[%c0_28, %c0_29, %c0_30] : memref<1x8x32xf32, #tpu.memory_space<vmem>>, vector<1x8x32xf32>
    %57 = vector.shape_cast %56 : vector<1x8x32xf32> to vector<8x32xf32>
    %58 = vector.shape_cast %55 : vector<8x32xf32> to vector<1x8x32xf32>
    tpu.vector_store %arg10[%c0_28, %c0_29, %c0_30], %58 {strides = array<i32>} : memref<1x8x32xf32, #tpu.memory_space<vmem>>, vector<1x8x32xf32>,
    %c0_i32 = arith.constant 0 : i32
    %59 = arith.cmpi eq, %arg1, %c0_i32 : i32
    %60 = arith.extui %59 : i1 to i32
    %c0_i32_31 = arith.constant 0 : i32
    %61 = arith.cmpi ne, %60, %c0_i32_31 : i32
    scf.if %61 {
      %cst_40 = arith.constant 0.000000e+00 : f32
      %72 = vector.broadcast %cst_40 : f32 to vector<1x32xf32>
      %c0_41 = arith.constant 0 : index
      %c0_42 = arith.constant 0 : index
      %c0_43 = arith.constant 0 : index
      %73 = vector.load %arg11[%c0_41, %c0_42, %c0_43] : memref<1x1x32xf32, #tpu.memory_space<vmem>>, vector<1x1x32xf32>
      %74 = vector.shape_cast %73 : vector<1x1x32xf32> to vector<1x32xf32>
      %75 = vector.shape_cast %72 : vector<1x32xf32> to vector<1x1x32xf32>
      tpu.vector_store %arg11[%c0_41, %c0_42, %c0_43], %75 {strides = array<i32>} : memref<1x1x32xf32, #tpu.memory_space<vmem>>, vector<1x1x32xf32>,
    } else {
    }
    %c0_32 = arith.constant 0 : index
    %c0_33 = arith.constant 0 : index
    %c0_34 = arith.constant 0 : index
    %62 = vector.load %arg11[%c0_32, %c0_33, %c0_34] : memref<1x1x32xf32, #tpu.memory_space<vmem>>, vector<1x1x32xf32>
    %63 = vector.shape_cast %62 : vector<1x1x32xf32> to vector<1x32xf32>
    %cst_35 = arith.constant dense<0.000000e+00> : vector<32xf32>
    %64 = vector.multi_reduction <add>, %55, %cst_35 [0] : vector<8x32xf32> to vector<32xf32>
    %65 = vector.shape_cast %64 : vector<32xf32> to vector<1x32xf32>
    %cst_36 = arith.constant 1.250000e-01 : f32
    %66 = vector.broadcast %cst_36 : f32 to vector<1x32xf32>
    %67 = arith.mulf %65, %66 : vector<1x32xf32>
    %68 = arith.addf %63, %67 : vector<1x32xf32>
    %c0_37 = arith.constant 0 : index
    %c0_38 = arith.constant 0 : index
    %c0_39 = arith.constant 0 : index
    %69 = vector.load %arg11[%c0_37, %c0_38, %c0_39] : memref<1x1x32xf32, #tpu.memory_space<vmem>>, vector<1x1x32xf32>
    %70 = vector.shape_cast %69 : vector<1x1x32xf32> to vector<1x32xf32>
    %71 = vector.shape_cast %68 : vector<1x32xf32> to vector<1x1x32xf32>
    tpu.vector_store %arg11[%c0_37, %c0_38, %c0_39], %71 {strides = array<i32>} : memref<1x1x32xf32, #tpu.memory_space<vmem>>, vector<1x1x32xf32>,
    return
  }
  func.func @transform_0(%arg0: i32, %arg1: i32, %arg2: memref<2xi32, #tpu.memory_space<smem>>) -> (i32, i32, i32) {
    %c0_i32 = arith.constant 0 : i32
    %c0_i32_0 = arith.constant 0 : i32
    return %arg0, %arg1, %c0_i32 : i32, i32, i32
  }
  func.func @transform_1(%arg0: i32, %arg1: i32, %arg2: memref<2xi32, #tpu.memory_space<smem>>) -> (i32, i32, i32) {
    %0 = arith.index_cast %arg0 : i32 to index
    %1 = memref.load %arg2[%0] : memref<2xi32, #tpu.memory_space<smem>>
    %c0_i32 = arith.constant 0 : i32
    %c0_i32_0 = arith.constant 0 : i32
    %c0_i32_1 = arith.constant 0 : i32
    return %1, %c0_i32, %c0_i32_0 : i32, i32, i32
  }
  func.func @transform_2(%arg0: i32, %arg1: i32, %arg2: memref<2xi32, #tpu.memory_space<smem>>) -> (i32, i32, i32) {
    %0 = arith.index_cast %arg0 : i32 to index
    %1 = memref.load %arg2[%0] : memref<2xi32, #tpu.memory_space<smem>>
    %c0_i32 = arith.constant 0 : i32
    %c0_i32_0 = arith.constant 0 : i32
    %c0_i32_1 = arith.constant 0 : i32
    return %1, %c0_i32, %c0_i32_0 : i32, i32, i32
  }
  func.func @transform_3(%arg0: i32, %arg1: i32, %arg2: memref<2xi32, #tpu.memory_space<smem>>) -> (i32, i32, i32) {
    %0 = arith.index_cast %arg0 : i32 to index
    %1 = memref.load %arg2[%0] : memref<2xi32, #tpu.memory_space<smem>>
    %c0_i32 = arith.constant 0 : i32
    %c0_i32_0 = arith.constant 0 : i32
    %c0_i32_1 = arith.constant 0 : i32
    return %1, %c0_i32, %c0_i32_0 : i32, i32, i32
  }
  func.func @transform_4(%arg0: i32, %arg1: i32, %arg2: memref<2xi32, #tpu.memory_space<smem>>) -> (i32, i32, i32) {
    %0 = arith.index_cast %arg0 : i32 to index
    %1 = memref.load %arg2[%0] : memref<2xi32, #tpu.memory_space<smem>>
    %c0_i32 = arith.constant 0 : i32
    %c0_i32_0 = arith.constant 0 : i32
    %c0_i32_1 = arith.constant 0 : i32
    return %1, %c0_i32, %c0_i32_0 : i32, i32, i32
  }
  func.func @transform_5(%arg0: i32, %arg1: i32, %arg2: memref<2xi32, #tpu.memory_space<smem>>) -> (i32, i32) {
    %c0_i32 = arith.constant 0 : i32
    %c0_i32_0 = arith.constant 0 : i32
    %c0_i32_1 = arith.constant 0 : i32
    return %c0_i32, %c0_i32_0 : i32, i32
  }
  func.func @transform_6(%arg0: i32, %arg1: i32, %arg2: memref<2xi32, #tpu.memory_space<smem>>) -> (i32, i32) {
    %c0_i32 = arith.constant 0 : i32
    %c0_i32_0 = arith.constant 0 : i32
    %c0_i32_1 = arith.constant 0 : i32
    return %c0_i32, %c0_i32_0 : i32, i32
  }
  func.func @transform_7(%arg0: i32, %arg1: i32, %arg2: memref<2xi32, #tpu.memory_space<smem>>) -> (i32, i32, i32) {
    %c0_i32 = arith.constant 0 : i32
    %c0_i32_0 = arith.constant 0 : i32
    return %arg0, %arg1, %c0_i32 : i32, i32, i32
  }
  func.func @transform_8(%arg0: i32, %arg1: i32, %arg2: memref<2xi32, #tpu.memory_space<smem>>) -> (i32, i32, i32) {
    %c0_i32 = arith.constant 0 : i32
    %c0_i32_0 = arith.constant 0 : i32
    %c0_i32_1 = arith.constant 0 : i32
    return %arg0, %c0_i32, %c0_i32_0 : i32, i32, i32
  }
}

module attributes {stable_mosaic.version = 11 : i64} {
  func.func @switch_ffn_kernel(%arg0: i32, %arg1: i32, %arg2: memref<2xi32, #tpu.memory_space<smem>>, %arg3: memref<1x8x32xf32, #tpu.memory_space<vmem>>, %arg4: memref<1x32x64xbf16, #tpu.memory_space<vmem>>, %arg5: memref<1x1x64xf32, #tpu.memory_space<vmem>>, %arg6: memref<1x64x32xbf16, #tpu.memory_space<vmem>>, %arg7: memref<1x1x32xf32, #tpu.memory_space<vmem>>, %arg8: memref<1x32xf32, #tpu.memory_space<vmem>>, %arg9: memref<1x32xf32, #tpu.memory_space<vmem>>, %arg10: memref<1x8x32xf32, #tpu.memory_space<vmem>>, %arg11: memref<1x1x32xf32, #tpu.memory_space<vmem>>) attributes {dimension_semantics = [#tpu.dimension_semantics<parallel>, #tpu.dimension_semantics<arbitrary>], iteration_bounds = array<i64: 2, 1>, scalar_prefetch = 1 : i64, scratch_operands = 0 : i64, tpu.core_type = #tpu.core_type<tc>, window_params = [{transform_indices = @transform_0, window_bounds = array<i64: 1, 8, 32>}, {transform_indices = @transform_1, window_bounds = array<i64: 1, 32, 64>}, {transform_indices = @transform_2, window_bounds = array<i64: 1, 1, 64>}, {transform_indices = @transform_3, window_bounds = array<i64: 1, 64, 32>}, {transform_indices = @transform_4, window_bounds = array<i64: 1, 1, 32>}, {pipeline_mode = #tpu.pipeline_mode<synchronous>, transform_indices = @transform_5, window_bounds = array<i64: 1, 32>}, {pipeline_mode = #tpu.pipeline_mode<synchronous>, transform_indices = @transform_6, window_bounds = array<i64: 1, 32>}, {transform_indices = @transform_7, window_bounds = array<i64: 1, 8, 32>}, {transform_indices = @transform_8, window_bounds = array<i64: 1, 1, 32>}]} {
    %c0 = arith.constant 0 : index
    %c0_0 = arith.constant 0 : index
    %c0_1 = arith.constant 0 : index
    %0 = vector.load %arg3[%c0, %c0_0, %c0_1] : memref<1x8x32xf32, #tpu.memory_space<vmem>>, vector<1x8x32xf32>
    %1 = vector.shape_cast %0 : vector<1x8x32xf32> to vector<8x32xf32>
    %2 = arith.truncf %1 : vector<8x32xf32> to vector<8x32xbf16>
    %c0_2 = arith.constant 0 : index
    %c0_3 = arith.constant 0 : index
    %c0_4 = arith.constant 0 : index
    %3 = vector.load %arg4[%c0_2, %c0_3, %c0_4] : memref<1x32x64xbf16, #tpu.memory_space<vmem>>, vector<1x32x64xbf16>
    %4 = vector.shape_cast %3 : vector<1x32x64xbf16> to vector<32x64xbf16>
    %cst = arith.constant dense<0.000000e+00> : vector<8x64xf32>
    %5 = tpu.matmul %2, %4, %cst {dimension_numbers = #tpu.dot_dimension_numbers<[1], [0], [0], [1], [0, 0, 1, 1], [], []>} : vector<8x32xbf16>, vector<32x64xbf16>, vector<8x64xf32> -> vector<8x64xf32>
    %c0_5 = arith.constant 0 : index
    %c0_6 = arith.constant 0 : index
    %c0_7 = arith.constant 0 : index
    %6 = vector.load %arg5[%c0_5, %c0_6, %c0_7] : memref<1x1x64xf32, #tpu.memory_space<vmem>>, vector<1x1x64xf32>
    %7 = vector.shape_cast %6 : vector<1x1x64xf32> to vector<1x64xf32>
    %8 = vector.broadcast %7 : vector<1x64xf32> to vector<8x64xf32>
    %9 = arith.addf %5, %8 : vector<8x64xf32>
    %cst_8 = arith.constant 5.000000e-01 : f32
    %10 = vector.broadcast %cst_8 : f32 to vector<8x64xf32>
    %11 = arith.mulf %10, %9 : vector<8x64xf32>
    %cst_9 = arith.constant 4.471500e-02 : f32
    %12 = vector.broadcast %cst_9 : f32 to vector<8x64xf32>
    %13 = arith.mulf %12, %9 : vector<8x64xf32>
    %14 = arith.mulf %13, %9 : vector<8x64xf32>
    %15 = arith.mulf %14, %9 : vector<8x64xf32>
    %16 = arith.addf %9, %15 : vector<8x64xf32>
    %cst_10 = arith.constant 0.797884583 : f32
    %17 = vector.broadcast %cst_10 : f32 to vector<8x64xf32>
    %18 = arith.mulf %17, %16 : vector<8x64xf32>
    %19 = math.tanh %18 : vector<8x64xf32>
    %cst_11 = arith.constant 1.000000e+00 : f32
    %20 = vector.broadcast %cst_11 : f32 to vector<8x64xf32>
    %21 = arith.addf %20, %19 : vector<8x64xf32>
    %22 = arith.mulf %11, %21 : vector<8x64xf32>
    %23 = arith.truncf %22 : vector<8x64xf32> to vector<8x64xbf16>
    %c0_12 = arith.constant 0 : index
    %c0_13 = arith.constant 0 : index
    %c0_14 = arith.constant 0 : index
    %24 = vector.load %arg6[%c0_12, %c0_13, %c0_14] : memref<1x64x32xbf16, #tpu.memory_space<vmem>>, vector<1x64x32xbf16>
    %25 = vector.shape_cast %24 : vector<1x64x32xbf16> to vector<64x32xbf16>
    %cst_15 = arith.constant dense<0.000000e+00> : vector<8x32xf32>
    %26 = tpu.matmul %23, %25, %cst_15 {dimension_numbers = #tpu.dot_dimension_numbers<[1], [0], [0], [1], [0, 0, 1, 1], [], []>} : vector<8x64xbf16>, vector<64x32xbf16>, vector<8x32xf32> -> vector<8x32xf32>
    %c0_16 = arith.constant 0 : index
    %c0_17 = arith.constant 0 : index
    %c0_18 = arith.constant 0 : index
    %27 = vector.load %arg7[%c0_16, %c0_17, %c0_18] : memref<1x1x32xf32, #tpu.memory_space<vmem>>, vector<1x1x32xf32>
    %28 = vector.shape_cast %27 : vector<1x1x32xf32> to vector<1x32xf32>
    %29 = vector.broadcast %28 : vector<1x32xf32> to vector<8x32xf32>
    %30 = arith.addf %26, %29 : vector<8x32xf32>
    %31 = arith.addf %1, %30 : vector<8x32xf32>
    %c0_19 = arith.constant 0 : index
    %c0_20 = arith.constant 0 : index
    %32 = vector.load %arg8[%c0_19, %c0_20] : memref<1x32xf32, #tpu.memory_space<vmem>>, vector<1x32xf32>
    %c0_21 = arith.constant 0 : index
    %c0_22 = arith.constant 0 : index
    %33 = vector.load %arg9[%c0_21, %c0_22] : memref<1x32xf32, #tpu.memory_space<vmem>>, vector<1x32xf32>
    %cst_23 = arith.constant dense<0.000000e+00> : vector<8xf32>
    %34 = vector.multi_reduction <add>, %31, %cst_23 [1] : vector<8x32xf32> to vector<8xf32>
    %35 = vector.shape_cast %34 : vector<8xf32> to vector<8x1xf32>
    %cst_24 = arith.constant 3.200000e+01 : f32
    %36 = vector.broadcast %cst_24 : f32 to vector<8x1xf32>
    %37 = arith.divf %35, %36 : vector<8x1xf32>
    %38 = vector.broadcast %37 : vector<8x1xf32> to vector<8x32xf32>
    %39 = arith.subf %31, %38 : vector<8x32xf32>
    %40 = arith.mulf %39, %39 : vector<8x32xf32>
    %cst_25 = arith.constant dense<0.000000e+00> : vector<8xf32>
    %41 = vector.multi_reduction <add>, %40, %cst_25 [1] : vector<8x32xf32> to vector<8xf32>
    %42 = vector.shape_cast %41 : vector<8xf32> to vector<8x1xf32>
    %cst_26 = arith.constant 3.200000e+01 : f32
    %43 = vector.broadcast %cst_26 : f32 to vector<8x1xf32>
    %44 = arith.divf %42, %43 : vector<8x1xf32>
    %45 = vector.broadcast %37 : vector<8x1xf32> to vector<8x32xf32>
    %46 = arith.subf %31, %45 : vector<8x32xf32>
    %cst_27 = arith.constant 9.99999996E-13 : f32
    %47 = vector.broadcast %cst_27 : f32 to vector<8x1xf32>
    %48 = arith.addf %44, %47 : vector<8x1xf32>
    %49 = math.rsqrt %48 : vector<8x1xf32>
    %50 = vector.broadcast %49 : vector<8x1xf32> to vector<8x32xf32>
    %51 = arith.mulf %46, %50 : vector<8x32xf32>
    %52 = vector.broadcast %32 : vector<1x32xf32> to vector<8x32xf32>
    %53 = arith.mulf %51, %52 : vector<8x32xf32>
    %54 = vector.broadcast %33 : vector<1x32xf32> to vector<8x32xf32>
    %55 = arith.addf %53, %54 : vector<8x32xf32>
    %c0_28 = arith.constant 0 : index
    %c0_29 = arith.constant 0 : index
    %c0_30 = arith.constant 0 : index
    %56 = vector.load %arg10[%c0_28, %c0_29, %c0_30] : memref<1x8x32xf32, #tpu.memory_space<vmem>>, vector<1x8x32xf32>
    %57 = vector.shape_cast %56 : vector<1x8x32xf32> to vector<8x32xf32>
    %58 = vector.shape_cast %55 : vector<8x32xf32> to vector<1x8x32xf32>
    tpu.vector_store %arg10[%c0_28, %c0_29, %c0_30], %58 {strides = array<i32>} : memref<1x8x32xf32, #tpu.memory_space<vmem>>, vector<1x8x32xf32>,
    %c0_i32 = arith.constant 0 : i32
    %59 = arith.cmpi eq, %arg1, %c0_i32 : i32
    %60 = arith.extui %59 : i1 to i32
    %c0_i32_31 = arith.constant 0 : i32
    %61 = arith.cmpi ne, %60, %c0_i32_31 : i32
    scf.if %61 {
      %cst_40 = arith.constant 0.000000e+00 : f32
      %72 = vector.broadcast %cst_40 : f32 to vector<1x32xf32>
      %c0_41 = arith.constant 0 : index
      %c0_42 = arith.constant 0 : index
      %c0_43 = arith.constant 0 : index
      %73 = vector.load %arg11[%c0_41, %c0_42, %c0_43] : memref<1x1x32xf32, #tpu.memory_space<vmem>>, vector<1x1x32xf32>
      %74 = vector.shape_cast %73 : vector<1x1x32xf32> to vector<1x32xf32>
      %75 = vector.shape_cast %72 : vector<1x32xf32> to vector<1x1x32xf32>
      tpu.vector_store %arg11[%c0_41, %c0_42, %c0_43], %75 {strides = array<i32>} : memref<1x1x32xf32, #tpu.memory_space<vmem>>, vector<1x1x32xf32>,
    } else {
    }
    %c0_32 = arith.constant 0 : index
    %c0_33 = arith.constant 0 : index
    %c0_34 = arith.constant 0 : index
    %62 = vector.load %arg11[%c0_32, %c0_33, %c0_34] : memref<1x1x32xf32, #tpu.memory_space<vmem>>, vector<1x1x32xf32>
    %63 = vector.shape_cast %62 : vector<1x1x32xf32> to vector<1x32xf32>
    %cst_35 = arith.constant dense<0.000000e+00> : vector<32xf32>
    %64 = vector.multi_reduction <add>, %55, %cst_35 [0] : vector<8x32xf32> to vector<32xf32>
    %65 = vector.shape_cast %64 : vector<32xf32> to vector<1x32xf32>
    %cst_36 = arith.constant 1.250000e-01 : f32
    %66 = vector.broadcast %cst_36 : f32 to vector<1x32xf32>
    %67 = arith.mulf %65, %66 : vector<1x32xf32>
    %68 = arith.addf %63, %67 : vector<1x32xf32>
    %c0_37 = arith.constant 0 : index
    %c0_38 = arith.constant 0 : index
    %c0_39 = arith.constant 0 : index
    %69 = vector.load %arg11[%c0_37, %c0_38, %c0_39] : memref<1x1x32xf32, #tpu.memory_space<vmem>>, vector<1x1x32xf32>
    %70 = vector.shape_cast %69 : vector<1x1x32xf32> to vector<1x32xf32>
    %71 = vector.shape_cast %68 : vector<1x32xf32> to vector<1x1x32xf32>
    tpu.vector_store %arg11[%c0_37, %c0_38, %c0_39], %71 {strides = array<i32>} : memref<1x1x32xf32, #tpu.memory_space<vmem>>, vector<1x1x32xf32>,
    return
  }
  func.func @transform_0(%arg0: i32, %arg1: i32, %arg2: memref<2xi32, #tpu.memory_space<smem>>) -> (i32, i32, i32) {
    %c0_i32 = arith.constant 0 : i32
    %c0_i32_0 = arith.constant 0 : i32
    return %arg0, %arg1, %c0_i32 : i32, i32, i32
  }
  func.func @transform_1(%arg0: i32, %arg1: i32, %arg2: memref<2xi32, #tpu.memory_space<smem>>) -> (i32, i32, i32) {
    %0 = arith.index_cast %arg0 : i32 to index
    %1 = memref.load %arg2[%0] : memref<2xi32, #tpu.memory_space<smem>>
    %c0_i32 = arith.constant 0 : i32
    %c0_i32_0 = arith.constant 0 : i32
    %c0_i32_1 = arith.constant 0 : i32
    return %1, %c0_i32, %c0_i32_0 : i32, i32, i32
  }
  func.func @transform_2(%arg0: i32, %arg1: i32, %arg2: memref<2xi32, #tpu.memory_space<smem>>) -> (i32, i32, i32) {
    %0 = arith.index_cast %arg0 : i32 to index
    %1 = memref.load %arg2[%0] : memref<2xi32, #tpu.memory_space<smem>>
    %c0_i32 = arith.constant 0 : i32
    %c0_i32_0 = arith.constant 0 : i32
    %c0_i32_1 = arith.constant 0 : i32
    return %1, %c0_i32, %c0_i32_0 : i32, i32, i32
  }
  func.func @transform_3(%arg0: i32, %arg1: i32, %arg2: memref<2xi32, #tpu.memory_space<smem>>) -> (i32, i32, i32) {
    %0 = arith.index_cast %arg0 : i32 to index
    %1 = memref.load %arg2[%0] : memref<2xi32, #tpu.memory_space<smem>>
    %c0_i32 = arith.constant 0 : i32
    %c0_i32_0 = arith.constant 0 : i32
    %c0_i32_1 = arith.constant 0 : i32
    return %1, %c0_i32, %c0_i32_0 : i32, i32, i32
  }
  func.func @transform_4(%arg0: i32, %arg1: i32, %arg2: memref<2xi32, #tpu.memory_space<smem>>) -> (i32, i32, i32) {
    %0 = arith.index_cast %arg0 : i32 to index
    %1 = memref.load %arg2[%0] : memref<2xi32, #tpu.memory_space<smem>>
    %c0_i32 = arith.constant 0 : i32
    %c0_i32_0 = arith.constant 0 : i32
    %c0_i32_1 = arith.constant 0 : i32
    return %1, %c0_i32, %c0_i32_0 : i32, i32, i32
  }
  func.func @transform_5(%arg0: i32, %arg1: i32, %arg2: memref<2xi32, #tpu.memory_space<smem>>) -> (i32, i32) {
    %c0_i32 = arith.constant 0 : i32
    %c0_i32_0 = arith.constant 0 : i32
    %c0_i32_1 = arith.constant 0 : i32
    return %c0_i32, %c0_i32_0 : i32, i32
  }
  func.func @transform_6(%arg0: i32, %arg1: i32, %arg2: memref<2xi32, #tpu.memory_space<smem>>) -> (i32, i32) {
    %c0_i32 = arith.constant 0 : i32
    %c0_i32_0 = arith.constant 0 : i32
    %c0_i32_1 = arith.constant 0 : i32
    return %c0_i32, %c0_i32_0 : i32, i32
  }
  func.func @transform_7(%arg0: i32, %arg1: i32, %arg2: memref<2xi32, #tpu.memory_space<smem>>) -> (i32, i32, i32) {
    %c0_i32 = arith.constant 0 : i32
    %c0_i32_0 = arith.constant 0 : i32
    return %arg0, %arg1, %c0_i32 : i32, i32, i32
  }
  func.func @transform_8(%arg0: i32, %arg1: i32, %arg2: memref<2xi32, #tpu.memory_space<smem>>) -> (i32, i32, i32) {
    %c0_i32 = arith.constant 0 : i32
    %c0_i32_0 = arith.constant 0 : i32
    %c0_i32_1 = arith.constant 0 : i32
    return %arg0, %c0_i32, %c0_i32_0 : i32, i32, i32
  }
}

</mosaic_0001>

<bundles_post_ra>
// kernel: bert_momo_share.4
= control target key start
LH: loop header
LB: loop body
LE: loop exit
PB: predicated region body
PF: predicated region fallthrough
CT: control target
= control target key end

     0   :  { %s1477_s0 = inlined_call_operand.vmem [shape: s32[2], index: 0, kind: input, shape index: {}]   ;;  %s1478_s1 = inlined_call_operand.vmem [shape: f32[2,8,32], index: 1, kind: input, shape index: {}]   ;;  %s1479_s2 = inlined_call_operand.vmem [shape: f32[2,1,8], index: 2, kind: input, shape index: {}]   ;;  %s1480_s3 = inlined_call_operand.vmem [shape: bf16[2,32,96], index: 3, kind: input, shape index: {}]   ;;  %s1481_s4 = inlined_call_operand.vmem [shape: f32[2,1,96], index: 4, kind: input, shape index: {}]   ;;  %s1482_s5 = inlined_call_operand.vmem [shape: bf16[2,32,32], index: 5, kind: input, shape index: {}]   ;;  %s1483_s6 = inlined_call_operand.vmem [shape: f32[2,1,32], index: 6, kind: input, shape index: {}]   ;;  %s1484_s7 = inlined_call_operand.vmem [shape: f32[2,1,32], index: 7, kind: input, shape index: {}]   ;;  %s1485_s8 = inlined_call_operand.vmem [shape: f32[2,1,32], index: 8, kind: input, shape index: {}]   ;;  %s1486_s9 = inlined_call_operand.vmem [shape: f32[2,8,32], index: 9, kind: output, shape index: {0}]   ;;  %s1487_s10 = inlined_call_operand.vmem [shape: f32[2,1,32], index: 10, kind: output, shape index: {1}]  }
   0x1   :  { %s16_s15 = sshll.u32 %s1477_s0, 4  ;;  %s17_s15 = int_to_ptr.vmem [resolvable:$true] %s16_s15 }
   0x2   :  { %s1269_s16 = scalar_lea.vmem %s17_s15, 16  ;;  %p1274_p1 = scmp.lt.s32.totalorder %s17_s15, %s17_s15 }
   0x3   :  { %p1270_p0 = scmp.ne.s32.totalorder %s17_s15, %s1269_s16  ;;  %p1275_p2 = scmp.lt.s32.totalorder %s1269_s16, %s1269_s16 }
   0x5   :  { %p1276_p3 = por %p1275_p2, %p1274_p1 }
   0x7   :  { %p1277_p4 = pnand %p1276_p3, %p1270_p0 }
   0x9   :  { %1280 = shalt.err (!%p1277_p4)  }
   0xa   :  { %s1291_s17 = smov [#allocation3]  }
   0xb   :  { %19 = dma.vmem_to_smem %s17_s15, 16, %s1291_s17, [#allocation2] }
   0xc   :  { %1285 = dma.done.wait [#allocation2], 16 }
   0xd   :  { %1286 = vsyncadd [#allocation2], 4294967280 }
   0xe   :  { %21 = sfence }
   0xf   :  { %s1355_s18 = smov 0  }
  0x10 LB: > { %s1361_s0 = sadd.s32 4294967295, %s1289_s18   ;;  %p1144_p5 = scmp.ge.s32.totalorder %s1289_s18, 1  ;;  %s1289_s18 = sphi %s1355_s18, %s27_s18  }
  0x11   : > { %p380_p6 = scmp.lt.s32.totalorder %s1289_s18, 3 }
  0x13   : > { %p381_p7 = pnand %p1144_p5, %p380_p6 }
  0x14   : > { %s455_s19 = sld [smem:[#allocation3 + %s1361_s0]] (!%p381_p7)  ;;  %p448_p8 = scmp.lt.s32.totalorder (!%p381_p7), %s1361_s0, 1 }
  0x15   : > { %384 = sbr.rel (%p381_p7) target bundleno = 1665 (0x681), region = 52  ;;  %s462_s24 = sld [smem:[#allocation3 + %s1361_s0]] (!%p381_p7) }
  0x16   : > { %s1294_s30 = smov (!%p381_p7), 96   ;;  %s1295_s17 = smov (!%p381_p7), 112  }
  0x17   : > { %s474_s11 = sld [smem:[#allocation3 + %s1361_s0]] (!%p381_p7) }
  0x18   : > { %s479_s15 = sld [smem:[#allocation3 + %s1361_s0]] (!%p381_p7) }
  0x1a   : > { %v1292_v0 = vmov 0.0   ;;  %s1370_s20 = scalar_select %p448_p8, %s1361_s0, 1  ;;  %vm1293_vm0 = vmmov 0   ;;  %vm581_vm1 = vcmask 253952   ;;  %vm528_vm2 = vcmask 261120  }
  0x1b   : > { %1191 = vmatprep.subr.bf16.mxu0 %v1292_v0  ;;  %1199 = vmatprep.subr.bf16.mxu1 %v1292_v0  ;;  %p456_p9 = scmp.lt.s32.totalorder %s455_s19, 1  ;;  %p463_p10 = scmp.lt.s32.totalorder %s462_s24, 1  ;;  %vm663_vm3 = vcmask 130048   ;;  %vm756_vm4 = vcmask 64512   ;;  %vm783_vm5 = vcmask 1043456  }
  0x1c   : > { %1195 = vmatprep.mubr.msk.bf16.mxu0 %vm1293_vm0, %v1292_v0  ;;  %s1378_s23 = scalar_lea.vmem %s1487_s10, %s1370_s20  ;;  %1203 = vmatprep.mubr.msk.bf16.mxu1 %vm1293_vm0, %v1292_v0  ;;  %s1145_s29 = sshll.u32 %s1370_s20, 3 }
  0x1d   : > { %s1489_s19 = smov (!%p456_p9, %s455_s19), 1  ;;  %582 = vst.msk [vmem:[%s1378_s23] sm:$0x1] %vm581_vm1, %v1292_v0  ;;  %s451_s13 = scalar_lea.vmem %s1478_s1, %s1145_s29 }
  0x1e   : > { %s1172_s25 = sshll.u32 %s1489_s19, 4  ;;  %s1491_s24 = smov (!%p463_p10, %s462_s24), 1  ;;  %v1398_v5 = vld [vmem:[%s451_s13] sm:$0xff] }
  0x1f   : > { %s460_s28 = scalar_lea.vmem %s1480_s3, %s1172_s25  ;;  %s465_s16 = scalar_lea.vmem %s1481_s4, %s1491_s24  ;;  %v498_v7 = vpack.c.bf16 %v1398_v5, %v1398_v5 }
  0x20   : > { %v1253_v1 = vld [vmem:[%s460_s28 + $0x8] sm:$0xff]   ;;  %v1254_v2 = vld [vmem:[%s460_s28] sm:$0xff]   ;;  %s454_s22 = scalar_lea.vmem %s1479_s2, %s1370_s20  ;;  %s467_s24 = sld [smem:[#allocation3 + %s1361_s0]] }
  0x21   : > { %521 = vrot.lane.b32.xlu0 %v1253_v1, %s1294_s30  ;;  %v1255_v3 = vld [vmem:[%s460_s28 + $0x8] sm:$0xff]   ;;  %v1256_v4 = vld [vmem:[%s460_s28] sm:$0xff]   ;;  %p475_p12 = scmp.lt.s32.totalorder %s474_s11, 1  ;;  %p480_p13 = scmp.lt.s32.totalorder %s479_s15, 1 }
  0x22   : > { %1200 = vmatpush3.bf16.msra.mxu1 %v1255_v3  ;;  %v1151_v6 = vld [vmem:[%s465_s16] ss:$0 sm:$0xff]  ;;  %s484_s16 = sld [smem:[#allocation3 + %s1361_s0]]  ;;  %s492_s27 = scalar_lea.vmem %s1486_s9, %s1145_s29 }
  0x23   : > { %1201 = vmatprep.subr.bf16.mxu1 %v1292_v0  ;;  %525 = vrot.lane.b32.xlu1 %v1151_v6, %s1294_s30  ;;  %v1159_v29 = vld [vmem:[%s454_s22] ss:$0 sm:$0xff]  ;;  %s1495_s11 = smov (!%p475_p12, %s474_s11), 1  ;;  %s1497_s15 = smov (!%p480_p13, %s479_s15), 1 }
  0x24   : > { %s477_s14 = scalar_lea.vmem %s1483_s6, %s1495_s11  ;;  %s482_s21 = scalar_lea.vmem %s1484_s7, %s1497_s15 }
  0x25   : > { %519 = vrot.lane.b32.xlu0 %v1254_v2, %s1294_s30 }
  0x26   : > { %1202 = vmatpush3.bf16.msra.mxu1 %v1256_v4  ;;  %p468_p11 = scmp.lt.s32.totalorder %s467_s24, 1 }
  0x27   : > { %1213 = vmatprep.subr.bf16.mxu1 %v1292_v0 }
  0x28   : > { %s1493_s24 = smov (!%p468_p11, %s467_s24), 1  ;;  %p485_p0 = scmp.lt.s32.totalorder %s484_s16, 1 }
  0x29   : > { %1204 = vmatmul.mubr.msk.bf16.vlgmr.msra.gmra.mxu1 %vm528_vm2, %v498_v7  ;;  %s1173_s25 = sshll.u32 %s1493_s24, 4 }
  0x2a   : > { %1215 = vmatprep.mubr.msk.bf16.mxu1 %vm1293_vm0, %v1292_v0  ;;  %s472_s28 = scalar_lea.vmem %s1482_s5, %s1173_s25  ;;  %s1499_s16 = smov (!%p485_p0, %s484_s16), 1 }
  0x2b   : > { %v1257_v58 = vld [vmem:[%s472_s28 + $0x8] sm:$0xff]   ;;  %v1258_v61 = vld [vmem:[%s472_s28] sm:$0xff]   ;;  %s487_s25 = scalar_lea.vmem %s1485_s8, %s1499_s16 }
  0x93   : > { %v522_v8 = vpop.permute.xlu0 %521 }
  0x94   : > { %1192 = vmatpush3.bf16.msra.mxu0 %v522_v8 }
  0x95   : > { %1193 = vmatprep.subr.bf16.mxu0 %v1292_v0  ;;  %v526_v15 = vpop.permute.xlu1 %525 }
  0x97   : > { %v520_v9 = vpop.permute.xlu0 %519 }
  0x98   : > { %1194 = vmatpush3.bf16.msra.mxu0 %v520_v9 }
  0x99   : > { %1207 = vmatprep.subr.bf16.mxu0 %v1292_v0 }
  0x9b   : > { %1196 = vmatmul.mubr.msk.bf16.vlgmr.msra.gmra.mxu0 %vm528_vm2, %v498_v7 }
  0x9c   : > { %1209 = vmatprep.mubr.msk.bf16.mxu0 %vm1293_vm0, %v1292_v0 }
  0xe9   : > { %v645_v10 = vpop.f32.mrf.mxu1 }
  0xea   : > { %v646_v11 = vadd.f32 %v1151_v6, %v645_v10 }
  0xeb   : > { %v1205_v12 = vpop.f32.mrf.mxu1 }
  0xec   : > { %652 = vrot.lane.b32.xlu0 %v646_v11, %s1295_s17  ;;  %v655_v23 = vpack.c.bf16 %v646_v11, %v646_v11 }
  0xed   : > { %v648_v13 = vpop.f32.mrf.mxu1 }
  0xef   : > { %v1206_v14 = vpop.f32.mrf.mxu1 }
  0xf0   : > { %v1164_v14 = vld [vmem:[%s477_s14] ss:$0 sm:$0xff] }
 0x15b   : > { %v566_v16 = vpop.f32.mrf.mxu0 }
 0x15c   : > { %v567_v17 = vadd.f32 %v566_v16, %v526_v15 }
 0x15d   : > { %v1197_v18 = vpop.f32.mrf.mxu0 }
 0x15e   : > { %v576_v19 = vpack.c.bf16 %v567_v17, %v567_v17  ;;  %573 = vrot.lane.b32.xlu1 %v567_v17, %s1295_s17  ;;  %v653_v27 = vpop.permute.xlu0 %652 }
 0x15f   : > { %v569_v20 = vpop.f32.mrf.mxu0  ;;  %v656_v28 = vpack.c.bf16 %v653_v27, %v653_v27 }
 0x160   : > { %v668_v21 = vsel %vm663_vm3, %v576_v19, 0 }
 0x161   : > { %v1198_v22 = vpop.f32.mrf.mxu0  ;;  %1208 = vmatpush3.bf16.xpose.msra.mxu0 %v668_v21 }
 0x162   : > { %1219 = vmatprep.subr.bf16.mxu0 %v1292_v0 }
 0x168   : > { %1210 = vmatmul.mubr.msk.bf16.vlgmr.msra.gmra.mxu0 %vm663_vm3, %v655_v23 }
 0x169   : > { %1221 = vmatprep.mubr.msk.bf16.mxu0 %vm1293_vm0, %v1292_v0 }
 0x1d0   : > { %v574_v24 = vpop.permute.xlu1 %573 }
 0x1d1   : > { %v577_v25 = vpack.c.bf16 %v574_v24, %v574_v24 }
 0x1d3   : > { %v714_v26 = vsel %vm663_vm3, %v577_v25, 0  ;;  %828 = vrot.lane.b32.xlu0 %v577_v25, %s1294_s30 }
 0x1d4   : > { %1214 = vmatpush3.bf16.xpose.msra.mxu1 %v714_v26 }
 0x1d5   : > { %1225 = vmatprep.subr.bf16.mxu1 %v1292_v0 }
 0x1db   : > { %1216 = vmatmul.mubr.msk.bf16.vlgmr.msra.gmra.mxu1 %vm663_vm3, %v656_v28 }
 0x1dc   : > { %1227 = vmatprep.mubr.msk.bf16.mxu1 %vm1293_vm0, %v1292_v0 }
 0x228   : > { %v704_v30 = vpop.f32.mrf.mxu0 }
 0x229   : > { %v705_v31 = vadd.f32 %v1159_v29, %v704_v30  ;;  %v1168_v30 = vld [vmem:[%s482_s21] ss:$0 sm:$0xff] }
 0x22a   : > { %v1211_v32 = vpop.f32.mrf.mxu0 }
 0x22b   : > { %v757_v33 = vsel %vm756_vm4, %v705_v31, -inf  ;;  %v1169_v32 = vld [vmem:[%s487_s25] ss:$0 sm:$0xff] }
 0x22c   : > { %758 = vmax.xlane.f32.xlu0 %v757_v33  ;;  %v707_v34 = vpop.f32.mrf.mxu0 }
 0x22e   : > { %v1212_v35 = vpop.f32.mrf.mxu0 }
 0x245   : > { %v829_v36 = vpop.permute.xlu0 %828 }
 0x246   : > { %v834_v37 = vsel %vm783_vm5, %v829_v36, 0 }
 0x247   : > { %1226 = vmatpush3.bf16.msra.mxu1 %v834_v37 }
 0x29b   : > { %v750_v38 = vpop.f32.mrf.mxu1 }
 0x29c   : > { %v751_v39 = vadd.f32 %v1159_v29, %v750_v38 }
 0x29d   : > { %v1217_v40 = vpop.f32.mrf.mxu1 }
 0x29e   : > { %v760_v41 = vsel %vm756_vm4, %v751_v39, -inf }
 0x29f   : > { %761 = vmax.xlane.f32.xlu1 %v760_v41  ;;  %v753_v42 = vpop.f32.mrf.mxu1 }
 0x2a0   : > { %v982_v42 = vld [vmem:[%s1378_s23] sm:$0x1] }
 0x2a1   : > { %v1218_v43 = vpop.f32.mrf.mxu1 }
 0x2b0   : > { %778 = vrot.lane.b32.xlu1 %v576_v19, %s1294_s30  ;;  %s1296_s30 = smov 16  }
 0x2b5   : > { %v759_v44 = vpop.xlane.xlu0 %758 }
 0x2b6   : > { %v763_v45 = vsub.f32 %v705_v31, %v759_v44 }
 0x2b8   : > { %v765_v46 = vmul.f32 1.442695, %v763_v45 }
 0x2ba   : > { %1259 = vpow2.f32 %v765_v46 }
 0x2c7   : > { %v1260_v50 = vpop.eup %1259 }
 0x2c8   : > { %v775_v53 = vpack.c.bf16 %v1260_v50, %v1260_v50  ;;  %v769_v57 = vsel %vm756_vm4, %v1260_v50, 0.0 }
 0x328   : > { %v762_v47 = vpop.xlane.xlu1 %761 }
 0x329   : > { %v764_v48 = vsub.f32 %v751_v39, %v762_v47 }
 0x32b   : > { %v767_v49 = vmul.f32 1.442695, %v764_v48 }
 0x32c   : > { %v779_v51 = vpop.permute.xlu1 %778 }
 0x32d   : > { %1261 = vpow2.f32 %v767_v49  ;;  %v785_v52 = vsel %vm783_vm5, %v779_v51, 0 }
 0x32e   : > { %1220 = vmatpush3.bf16.msra.mxu0 %v785_v52 }
 0x32f   : > { %1231 = vmatprep.subr.bf16.mxu0 %v1292_v0 }
 0x331   : > { %1222 = vmatmul.mubr.msk.bf16.vlgmr.msra.gmra.mxu0 %vm756_vm4, %v775_v53 }
 0x332   : > { %1235 = vmatprep.mubr.msk.bf16.mxu0 %vm1293_vm0, %v1292_v0  ;;  %1232 = vmatpush3.bf16.msra.mxu0 %v1257_v58 }
 0x333   : > { %1233 = vmatprep.subr.bf16.mxu0 %v1292_v0 }
 0x336   : > { %1234 = vmatpush3.bf16.msra.mxu0 %v1258_v61 }
 0x33a   : > { %v1262_v54 = vpop.eup %1261 }
 0x33b   : > { %v772_v55 = vsel %vm756_vm4, %v1262_v54, 0.0  ;;  %v776_v56 = vpack.c.bf16 %v1262_v54, %v1262_v54 }
 0x33c   : > { %773 = vadd.xlane.f32.xlu0 %v772_v55 }
 0x33d   : > { %1228 = vmatmul.mubr.msk.bf16.vlgmr.msra.gmra.mxu1 %vm756_vm4, %v776_v56 }
 0x340   : > { %770 = vadd.xlane.f32.xlu0 %v769_v57 }
 0x3c5   : > { %v774_v59 = vpop.xlane.xlu0 %773 }
 0x3c6   : > { %1263 = vrcp.f32 %v774_v59 }
 0x3c9   : > { %v771_v9 = vpop.xlane.xlu0 %770 }
 0x3ca   : > { %1265 = vrcp.f32 %v771_v9 }
 0x3d3   : > { %v1264_v2 = vpop.eup %1263 }
 0x3d7   : > { %v1266_v0 = vpop.eup %1265 }
 0x3f1   : > { %v821_v60 = vpop.f32.mrf.mxu0 }
 0x3f2   : > { %v878_v10 = vmul.f32 %v1266_v0, %v821_v60 }
 0x3f3   : > { %v1223_v62 = vpop.f32.mrf.mxu0 }
 0x3f5   : > { %v824_v63 = vpop.f32.mrf.mxu0 }
 0x3f7   : > { %v1224_v1 = vpop.f32.mrf.mxu0 }
 0x3fd   : > { %v870_v3 = vpop.f32.mrf.mxu1 }
 0x3fe   : > { %v879_v4 = vmul.f32 %v1264_v2, %v870_v3 }
 0x3ff   : > { %v1229_v6 = vpop.f32.mrf.mxu1 }
 0x400   : > { %881 = vrot.lane.b32.xlu0 %v879_v4, %s1296_s30 }
 0x401   : > { %v873_v7 = vpop.f32.mrf.mxu1 }
 0x403   : > { %v1230_v8 = vpop.f32.mrf.mxu1 }
 0x472   : > { %v882_v11 = vpop.permute.xlu0 %881 }
 0x473   : > { %v884_v12 = vsel %vm663_vm3, %v878_v10, %v882_v11 }
 0x474   : > { %v885_v13 = vpack.c.bf16 %v884_v12, %v884_v12 }
 0x476   : > { %1236 = vmatmul.mubr.msk.bf16.vlgmr.msra.gmra.mxu0 %vm528_vm2, %v885_v13 }
 0x536   : > { %v946_v15 = vpop.f32.mrf.mxu0 }
 0x537   : > { %v947_v16 = vadd.f32 %v1164_v14, %v946_v15 }
 0x538   : > { %v1237_v17 = vpop.f32.mrf.mxu0 }
 0x539   : > { %v952_v18 = vadd.f32 %v947_v16, %v1398_v5 }
 0x53a   : > { %v949_v19 = vpop.f32.mrf.mxu0 }
 0x53b   : > { %v953_v20 = vsel %vm528_vm2, %v952_v18, 0.0 }
 0x53c   : > { %954 = vadd.xlane.f32.xlu1 %v953_v20  ;;  %v1238_v21 = vpop.f32.mrf.mxu0 }
 0x5c5   : > { %v955_v22 = vpop.xlane.xlu1 %954 }
 0x5c6   : > { %v957_v23 = vmul.f32 0.03125, %v955_v22 }
 0x5c8   : > { %v958_v24 = vsub.f32 %v952_v18, %v957_v23 }
 0x5ca   : > { %v959_v25 = vmul.f32 %v958_v24, %v958_v24 }
 0x5cc   : > { %v960_v26 = vsel %vm528_vm2, %v959_v25, 0.0 }
 0x5cd   : > { %961 = vadd.xlane.f32.xlu0 %v960_v26 }
 0x656   : > { %v962_v27 = vpop.xlane.xlu0 %961 }
 0x657   : > { %v963_v28 = vmul.f32 0.03125, %v962_v27 }
 0x659   : > { %v964_v29 = vadd.f32 1e-12, %v963_v28 }
 0x65b   : > { %1267 = vrsqrt.f32 %v964_v29 }
 0x668   : > { %v1268_v5 = vpop.eup %1267 }
 0x669   : > { %v966_v31 = vmul.f32 %v1268_v5, %v958_v24 }
 0x66b   : > { %v973_v33 = vmul.f32 %v1168_v30, %v966_v31 }
 0x66d   : > { %v980_v34 = vadd.f32 %v1169_v32, %v973_v33 }
 0x66f   : > { %981 = vst.msk [vmem:[%s492_s27] sm:$0xff] %vm528_vm2, %v980_v34  ;;  %v983_v35 = vsel %vm528_vm2, %v980_v34, 0.0 }
 0x670   : > { %v984_v36 = vrot.slane %v983_v35, 4 }
 0x672   : > { %v985_v37 = vadd.f32 %v984_v36, %v983_v35 }
 0x674   : > { %v986_v38 = vrot.slane %v985_v37, 2 }
 0x676   : > { %v987_v39 = vadd.f32 %v986_v38, %v985_v37 }
 0x678   : > { %v988_v40 = vrot.slane %v987_v39, 1 }
 0x67a   : > { %v989_v41 = vadd.f32 %v988_v40, %v987_v39 }
 0x67c   : > { %v990_v43 = vmul.f32 0.125, %v989_v41 }
 0x67e   : > { %v991_v44 = vadd.f32 %v990_v43, %v982_v42 }
 0x680   : > { %992 = vst.msk [vmem:[%s1378_s23] sm:$0x1] %vm581_vm1, %v991_v44 }
 0x681 PF: > { %s27_s18 = sadd.s32 1, %s1289_s18  }
 0x682   : > { %p24_p1 = scmp.ge.s32.totalorder %s27_s18, 4  }
 0x684   :  { %26 = sbr.rel (!%p24_p1) target bundleno = 16 (0x10), region = 115 }

// kernel: bert_momo_share.7
= control target key start
LH: loop header
LB: loop body
LE: loop exit
PB: predicated region body
PF: predicated region fallthrough
CT: control target
= control target key end

     0   :  { %s1313_s0 = inlined_call_operand.vmem [shape: s32[2], index: 0, kind: input, shape index: {}]   ;;  %s1314_s1 = inlined_call_operand.vmem [shape: f32[2,8,32], index: 1, kind: input, shape index: {}]   ;;  %s1315_s2 = inlined_call_operand.vmem [shape: bf16[2,32,64], index: 2, kind: input, shape index: {}]   ;;  %s1316_s3 = inlined_call_operand.vmem [shape: f32[2,1,64], index: 3, kind: input, shape index: {}]   ;;  %s1317_s4 = inlined_call_operand.vmem [shape: bf16[2,64,32], index: 4, kind: input, shape index: {}]   ;;  %s1318_s5 = inlined_call_operand.vmem [shape: f32[2,1,32], index: 5, kind: input, shape index: {}]   ;;  %s1319_s6 = inlined_call_operand.vmem [shape: f32[1,32], index: 6, kind: input, shape index: {}]   ;;  %s1320_s7 = inlined_call_operand.vmem [shape: f32[1,32], index: 7, kind: input, shape index: {}]   ;;  %s1321_s8 = inlined_call_operand.hbm [shape: f32[2,8,32], index: 8, kind: output, shape index: {0}]   ;;  %s1322_s9 = inlined_call_operand.hbm [shape: f32[2,1,32], index: 9, kind: output, shape index: {1}]  }
   0x1   :  { %1323 = sst [smem:[#allocation11_spill]] %s1314_s1  ;;  %s15_s11 = sshll.u32 %s1313_s0, 4  ;;  %s16_s11 = int_to_ptr.vmem [resolvable:$true] %s15_s11 }
   0x2   :  { %1324 = sst [smem:[#allocation12_spill]] %s1315_s2  ;;  %s956_s12 = scalar_lea.vmem %s16_s11, 16 }
   0x3   :  { %p957_p0 = scmp.ne.s32.totalorder %s16_s11, %s956_s12  ;;  %p961_p1 = scmp.lt.s32.totalorder %s16_s11, %s16_s11 }
   0x4   :  { %p962_p2 = scmp.lt.s32.totalorder %s956_s12, %s956_s12 }
   0x6   :  { %p963_p3 = por %p962_p2, %p961_p1 }
   0x8   :  { %p964_p4 = pnand %p963_p3, %p957_p0 }
   0xa   :  { %967 = shalt.err (!%p964_p4)  }
   0xb   :  { %s1078_s13 = smov [#allocation3]  }
   0xc   :  { %18 = dma.vmem_to_smem %s16_s11, 16, %s1078_s13, [#allocation2] }
   0xd   :  { %1044 = dma.done.wait [#allocation2], 16 }
   0xe   :  { %1045 = vsyncadd [#allocation2], 4294967280 }
   0xf   :  { %20 = sfence }
  0x10   :  { %21 = vsyncpa [#allocation5], 0 }
  0x11   :  { %23 = vsyncpa [#allocation5 + $0x1], 0 }
  0x12   :  { %24 = vsyncpa [#allocation7], 0 }
  0x13   :  { %26 = vsyncpa [#allocation7 + $0x1], 0  ;;  %s1136_s14 = smov 0   ;;  %s1138_s0 = smov 0  }
  0x14   :  { %s1140_s15 = smov 0   ;;  %s1142_s16 = smov 0  }
  0x15   :  { %s1144_s17 = smov 0   ;;  %s1146_s18 = smov 0  }
  0x16 LB: > { %s825_s19 = sadd.s32 4294967295, %s1076_s18   ;;  %s826_s20 = sadd.s32 4294967294, %s1076_s18   ;;  %s1076_s18 = sphi %s1146_s18, %s32_s18   ;;  %s1072_s17 = sphi %s1144_s17, %s1333_s17   ;;  %s1068_s16 = sphi %s1142_s16, %s1332_s16   ;;  %s1064_s15 = sphi %s1140_s15, %s1331_s15   ;;  %s1060_s0 = sphi %s1138_s0, %s1330_s0   ;;  %s1056_s14 = sphi %s1136_s14, %s1329_s14  }
  0x17   : > { %s44_s21 = sadd.s32 1, %s1072_s17  ;;  %s235_s22 = sadd.s32 1, %s1064_s15 }
  0x18   : > { %p46_p5 = scmp.ge.s32.totalorder %s44_s21, 2  ;;  %p245_p6 = scmp.ne.s32.totalorder %s1064_s15, %s1060_s0 }
  0x19   : > { %p246_p7 = scmp.eq.s32.totalorder %s825_s19, 1  ;;  %p251_p8 = scmp.ne.s32.totalorder %s1060_s0, %s1056_s14 }
  0x1a   : > { %s1335_s21 = smov (%p46_p5, %s44_s21), 0  ;;  %p252_p10 = scmp.eq.s32.totalorder %s826_s20, 1 }
  0x1b   : > { %p1176_p9 = por %p246_p7, %p245_p6  ;;  %s230_s24 = ssub.s32 %s1072_s17, %s1335_s21 }
  0x1c   : > { %p829_p11 = scmp.ge.s32.totalorder %s1076_s18, 1  ;;  %p233_p12 = scmp.eq.s32.totalorder %s230_s24, 0 }
  0x1d   : > { %p1183_p13 = por %p252_p10, %p251_p8  ;;  %p348_p0 = scmp.lt.s32.totalorder %s1076_s18, 3 }
  0x1e   : > { %s1189_s26 = scalar_select %p233_p12, %s1064_s15, %s235_s22  }
  0x1f   : > { %p349_p1 = pnand %p829_p11, %p348_p0 }
  0x20   : > { %s415_s27 = sld [smem:[#allocation3 + %s1068_s16]] (!%p349_p1)  ;;  %p408_p2 = scmp.lt.s32.totalorder (!%p349_p1), %s1068_s16, 1 }
  0x21   : > { %352 = sbr.rel (%p349_p1) target bundleno = 822 (0x336), region = 48  ;;  %s1327_s2 = sld [smem:[#allocation12_spill]] (!%p349_p1) }
  0x22   : > { %s1328_s1 = sld [smem:[#allocation11_spill]] (!%p349_p1) }
  0x23   : > { %s427_s22 = sld [smem:[#allocation3 + %s1068_s16]] (!%p349_p1) }
  0x24   : > { %s434_s13 = sld [smem:[#allocation3 + %s1068_s16]] (!%p349_p1) }
  0x26   : > { %v1079_v0 = vmov 0.0   ;;  %vm1080_vm0 = vmmov 0   ;;  %s409_s28 = scalar_select %p408_p2, %s1068_s16, 1  ;;  %vm465_vm1 = vcmask 261120   ;;  %vm558_vm2 = vcmask 523264  }
  0x27   : > { %863 = vmatprep.subr.bf16.mxu0 %v1079_v0  ;;  %867 = vmatprep.mubr.msk.bf16.mxu0 %vm1080_vm0, %v1079_v0  ;;  %p416_p3 = scmp.lt.s32.totalorder %s415_s27, 1  ;;  %vm638_vm3 = vcmask 253952   ;;  %v846_v42 = vld [vmem:[%s1319_s6] ss:$0 sm:$0xff] }
  0x28   : > { %871 = vmatprep.subr.bf16.mxu1 %v1079_v0  ;;  %879 = vmatprep.mubr.msk.bf16.mxu1 %vm1080_vm0, %v1079_v0  ;;  %s831_s29 = sshll.u32 %s409_s28, 3  ;;  %v847_v44 = vld [vmem:[%s1320_s7] ss:$0 sm:$0xff] }
  0x29   : > { %s1337_s27 = smov (!%p416_p3, %s415_s27), 1  ;;  %s414_s20 = scalar_lea.vmem %s1328_s1, %s831_s29 }
  0x2a   : > { %s853_s30 = sshll.u32 %s1337_s27, 4  ;;  %v440_v3 = vld [vmem:[%s414_s20] sm:$0xff]  ;;  %p428_p4 = scmp.lt.s32.totalorder %s427_s22, 1 }
  0x2b   : > { %s420_s12 = scalar_lea.vmem %s1327_s2, %s853_s30  ;;  %v441_v4 = vpack.c.bf16 %v440_v3, %v440_v3  ;;  %s422_s30 = sld [smem:[#allocation3 + %s1068_s16]] }
  0x2c   : > { %v946_v1 = vld [vmem:[%s420_s12 + $0x8] sm:$0xff]   ;;  %v947_v2 = vld [vmem:[%s420_s12] sm:$0xff]   ;;  %s1339_s22 = smov (!%p428_p4, %s427_s22), 1  ;;  %p435_p6 = scmp.lt.s32.totalorder %s434_s13, 1 }
  0x2d   : > { %864 = vmatpush3.bf16.msra.mxu0 %v946_v1  ;;  %s854_s24 = sshll.u32 %s1339_s22, 5 }
  0x2e   : > { %865 = vmatprep.subr.bf16.mxu0 %v1079_v0  ;;  %s432_s29 = scalar_lea.vmem %s1317_s4, %s854_s24  ;;  %s1343_s13 = smov (!%p435_p6, %s434_s13), 1 }
  0x2f   : > { %v948_v5 = vld [vmem:[%s432_s29 + $0x18] sm:$0xff]   ;;  %v949_v6 = vld [vmem:[%s432_s29 + $0x10] sm:$0xff]   ;;  %v950_v7 = vld [vmem:[%s432_s29 + $0x8] sm:$0xff]   ;;  %s437_s22 = scalar_lea.vmem %s1318_s5, %s1343_s13  ;;  %s1224_s24 = sand.u32 1, %s1060_s0  }
  0x30   : > { %872 = vmatpush3.bf16.msra.mxu1 %v948_v5  ;;  %v951_v8 = vld [vmem:[%s432_s29] sm:$0xff]   ;;  %s1227_s27 = scalar_lea.vmem [#allocation6], %s1224_s24  ;;  %s830_s28 = sshll.u32 %s1224_s24, 3 }
  0x31   : > { %866 = vmatpush3.bf16.msra.mxu0 %v947_v2  ;;  %873 = vmatprep.subr.bf16.mxu1 %v1079_v0  ;;  %p423_p5 = scmp.lt.s32.totalorder %s422_s30, 1  ;;  %v840_v25 = vld [vmem:[%s437_s22] ss:$0 sm:$0xff]  ;;  %639 = vst.msk [vmem:[%s1227_s27] sm:$0x1] %vm638_vm3, %v1079_v0  ;;  %s401_s13 = scalar_lea.vmem [#allocation4], %s830_s28 }
  0x32   : > { %s671_s19 = sshll.u32 %s401_s13, 4  ;;  %s653_s29 = scalar_lea.sflag [#allocation5], %s1224_s24  ;;  %s1245_s19 = int_to_ptr.vmem [resolvable:$true] %s671_s19 }
  0x33   : > { %s1341_s30 = smov (!%p423_p5, %s422_s30), 1  ;;  %s968_s28 = scalar_lea.vmem %s1245_s19, 128 }
  0x34   : > { %868 = vmatmul.mubr.msk.bf16.vlgmr.msra.gmra.mxu0 %vm465_vm1, %v441_v4  ;;  %874 = vmatpush3.bf16.msra.mxu1 %v949_v6  ;;  %s425_s12 = scalar_lea.vmem %s1316_s3, %s1341_s30  ;;  %p969_p7 = scmp.ne.s32.totalorder %s1245_s19, %s968_s28 }
  0x35   : > { %875 = vmatprep.subr.bf16.mxu1 %v1079_v0  ;;  %v836_v9 = vld [vmem:[%s425_s12] ss:$0 sm:$0xff]  ;;  %s849_s12 = sshll.u32 %s1068_s16, 7  ;;  %s1081_s30 = smov [#allocation4]  }
  0x36   : > { %s1243_s1 = scalar_lea.hbm %s1321_s8, %s849_s12  ;;  %p970_p8 = pnand %p969_p7, %p1176_p9 }
  0x37   : > { %s972_s10 = sshll.u32 %s1081_s30, 4  ;;  %s973_s10 = int_to_ptr.vmem [resolvable:$false] %s972_s10 }
  0x38   : > { %876 = vmatpush3.bf16.msra.mxu1 %v950_v7  ;;  %p971_p10 = pneg %p970_p8  ;;  %s974_s11 = scalar_lea.vmem %s973_s10, 256 }
  0x39   : > { %877 = vmatprep.subr.bf16.mxu1 %v1079_v0  ;;  %p975_p11 = scmp.lt.s32.totalorder %s1245_s19, %s973_s10  ;;  %p976_p12 = scmp.lt.s32.totalorder %s974_s11, %s968_s28 }
  0x3b   : > { %p977_p0 = por %p976_p12, %p975_p11 }
  0x3c   : > { %878 = vmatpush3.bf16.msra.mxu1 %v951_v8 }
  0x3d   : > { %p978_p1 = pnand %p977_p0, %p971_p10 }
  0xf4   : > { %v503_v10 = vpop.f32.mrf.mxu0 }
  0xf5   : > { %v504_v11 = vadd.f32 %v836_v9, %v503_v10 }
  0xf6   : > { %v869_v12 = vpop.f32.mrf.mxu0 }
  0xf7   : > { %v510_v13 = vmul.f32 0.044715, %v504_v11  ;;  %v509_v21 = vmul.f32 0.5, %v504_v11 }
  0xf8   : > { %v506_v14 = vpop.f32.mrf.mxu0 }
  0xf9   : > { %v511_v15 = vmul.f32 %v510_v13, %v504_v11 }
  0xfa   : > { %v870_v16 = vpop.f32.mrf.mxu0 }
  0xfb   : > { %v512_v17 = vmul.f32 %v511_v15, %v504_v11 }
  0xfd   : > { %v513_v18 = vadd.f32 %v512_v17, %v504_v11 }
  0xff   : > { %v514_v19 = vmul.f32 0.7978846, %v513_v18 }
 0x101   : > { %952 = vtanh.f32 %v514_v19 }
 0x10e   : > { %v953_v20 = vpop.eup %952 }
 0x10f   : > { %v516_v22 = vadd.f32 1.0, %v953_v20 }
 0x111   : > { %v517_v23 = vmul.f32 %v516_v22, %v509_v21 }
 0x113   : > { %v518_v24 = vpack.c.bf16 %v517_v23, %v517_v23 }
 0x115   : > { %880 = vmatmul.mubr.msk.bf16.vlgmr.msra.gmra.mxu1 %vm558_vm2, %v518_v24 }
 0x1d5   : > { %v596_v26 = vpop.f32.mrf.mxu1 }
 0x1d6   : > { %v597_v27 = vadd.f32 %v840_v25, %v596_v26 }
 0x1d7   : > { %v881_v28 = vpop.f32.mrf.mxu1 }
 0x1d8   : > { %v602_v29 = vadd.f32 %v597_v27, %v440_v3 }
 0x1d9   : > { %v599_v30 = vpop.f32.mrf.mxu1 }
 0x1da   : > { %v605_v31 = vsel %vm465_vm1, %v602_v29, 0.0 }
 0x1db   : > { %606 = vadd.xlane.f32.xlu0 %v605_v31  ;;  %v882_v32 = vpop.f32.mrf.mxu1 }
 0x264   : > { %v607_v33 = vpop.xlane.xlu0 %606 }
 0x265   : > { %v609_v34 = vmul.f32 0.03125, %v607_v33 }
 0x267   : > { %v610_v35 = vsub.f32 %v602_v29, %v609_v34 }
 0x269   : > { %v611_v36 = vmul.f32 %v610_v35, %v610_v35 }
 0x26b   : > { %v612_v37 = vsel %vm465_vm1, %v611_v36, 0.0 }
 0x26c   : > { %613 = vadd.xlane.f32.xlu0 %v612_v37 }
 0x2f5   : > { %v614_v38 = vpop.xlane.xlu0 %613 }
 0x2f6   : > { %v615_v39 = vmul.f32 0.03125, %v614_v38 }
 0x2f8   : > { %v616_v40 = vadd.f32 1e-12, %v615_v39 }
 0x2fa   : > { %954 = vrsqrt.f32 %v616_v40 }
 0x307   : > { %v955_v41 = vpop.eup %954 }
 0x308   : > { %v618_v43 = vmul.f32 %v955_v41, %v610_v35 }
 0x30a   : > { %v625_v45 = vmul.f32 %v846_v42, %v618_v43 }
 0x30c   : > { %v632_v46 = vadd.f32 %v847_v44, %v625_v45 }
 0x30e   : > { %633 = vst.msk [vmem:[%s401_s13] sm:$0xff] %vm465_vm1, %v632_v46  ;;  %v641_v47 = vsel %vm465_vm1, %v632_v46, 0.0 }
 0x30f   : > { %v642_v48 = vrot.slane %v641_v47, 4 }
 0x310   : > { %981 = shalt.err (!%p978_p1)
}
 0x311   : > { %s982_s12 = scalar_lea.hbm %s1243_s1, 128  ;;  %s986_s22 = scalar_lea.hbm %s1321_s8, 256 }
 0x312   : > { %p983_p2 = scmp.ne.s32.totalorder %s1243_s1, %s982_s12  ;;  %p987_p5 = scmp.lt.s32.totalorder %s1243_s1, %s1321_s8 }
 0x313   : > { %p988_p6 = scmp.lt.s32.totalorder %s986_s22, %s982_s12 }
 0x314   : > { %p984_p3 = pnand %p983_p2, %p1176_p9 }
 0x315   : > { %p989_p7 = por %p988_p6, %p987_p5 }
 0x316   : > { %p985_p4 = pneg %p984_p3 }
 0x318   : > { %p990_p8 = pnand %p989_p7, %p985_p4 }
 0x31a   : > { %993 = shalt.err (!%p990_p8)
}
 0x31b   : > { %883 = dma.vmem_to_hbm [thread:$0]  (%p1176_p9), %s1245_s19, 128, %s1243_s1, %s653_s29   ;;  %v643_v49 = vadd.f32 %v642_v48, %v641_v47  ;;  %v640_v54 = vld [vmem:[%s1227_s27] sm:$0x1] }
 0x31c   : > { %s850_s2 = sshll.u32 %s1068_s16, 4  ;;  %s684_s28 = sshll.u32 %s1227_s27, 4  ;;  %s685_s28 = int_to_ptr.vmem [resolvable:$true] %s684_s28 }
 0x31d   : > { %v644_v50 = vrot.slane %v643_v49, 2  ;;  %s682_s12 = scalar_lea.hbm %s1322_s9, %s850_s2  ;;  %s658_s13 = scalar_lea.sflag [#allocation7], %s1224_s24 }
 0x31e   : > { %s994_s1 = scalar_lea.vmem %s685_s28, 16  ;;  %s1082_s19 = smov [#allocation6]  }
 0x31f   : > { %v645_v51 = vadd.f32 %v644_v50, %v643_v49  ;;  %p995_p10 = scmp.ne.s32.totalorder %s685_s28, %s994_s1  ;;  %s998_s29 = sshll.u32 %s1082_s19, 4  ;;  %s999_s29 = int_to_ptr.vmem [resolvable:$false] %s998_s29 }
 0x320   : > { %s1000_s16 = scalar_lea.vmem %s999_s29, 32  ;;  %p1001_p0 = scmp.lt.s32.totalorder %s685_s28, %s999_s29 }
 0x321   : > { %v646_v52 = vrot.slane %v645_v51, 1  ;;  %p996_p11 = pnand %p995_p10, %p1176_p9  ;;  %p1002_p1 = scmp.lt.s32.totalorder %s1000_s16, %s994_s1 }
 0x323   : > { %v647_v53 = vadd.f32 %v646_v52, %v645_v51  ;;  %p997_p12 = pneg %p996_p11  ;;  %p1003_p2 = por %p1002_p1, %p1001_p0 }
 0x325   : > { %v648_v55 = vmul.f32 0.125, %v647_v53  ;;  %p1004_p3 = pnand %p1003_p2, %p997_p12 }
 0x327   : > { %v649_v56 = vadd.f32 %v648_v55, %v640_v54 }
 0x329   : > { %651 = vst.msk [vmem:[%s1227_s27] sm:$0x1] %vm638_vm3, %v649_v56 }
 0x32a   : > { %1007 = shalt.err (!%p1004_p3)
}
 0x32b   : > { %s1008_s20 = scalar_lea.hbm %s682_s12, 16  ;;  %s1012_s22 = scalar_lea.hbm %s1322_s9, 32 }
 0x32c   : > { %p1009_p4 = scmp.ne.s32.totalorder %s682_s12, %s1008_s20  ;;  %p1013_p7 = scmp.lt.s32.totalorder %s682_s12, %s1322_s9 }
 0x32d   : > { %p1014_p8 = scmp.lt.s32.totalorder %s1012_s22, %s1008_s20 }
 0x32e   : > { %p1010_p5 = pnand %p1009_p4, %p1176_p9 }
 0x32f   : > { %p1015_p10 = por %p1014_p8, %p1013_p7 }
 0x330   : > { %p1011_p6 = pneg %p1010_p5 }
 0x332   : > { %p1016_p11 = pnand %p1015_p10, %p1011_p6 }
 0x334   : > { %1019 = shalt.err (!%p1016_p11)
}
 0x335   : > { %884 = dma.vmem_to_hbm [thread:$0]  (%p1176_p9), %s685_s28, 16, %s682_s12, %s658_s13  }
 0x336 PF: > { %p894_p12 = scmp.ge.s32.totalorder %s1076_s18, 2  ;;  %s696_s10 = sand.u32 1, %s1056_s14  }
 0x337   : > { %s697_s11 = scalar_lea.sflag [#allocation5], %s696_s10 }
 0x338   : > { %p888_p0 = pnand %p894_p12, %p1183_p13 }
 0x33a   : > { %p889_p1 = pneg %p888_p0 }
 0x33c   : > { %1047 = dma.done.wait (%p889_p1), %s697_s11, 128  }
 0x33d   : > { %1049 = vsyncadd (%p889_p1), %s697_s11, 4294967168  ;;  %s706_s1 = scalar_lea.sflag [#allocation7], %s696_s10 }
 0x33e   : > { %1051 = dma.done.wait (%p889_p1), %s706_s1, 16  }
 0x33f   : > { %1053 = vsyncadd (%p889_p1), %s706_s1, 4294967280  ;;  %s32_s18 = sadd.s32 1, %s1076_s18   ;;  %s1329_s14 = smov %s1060_s0 }
 0x340   : > { %p29_p2 = scmp.ge.s32.totalorder %s32_s18, 4   ;;  %s1330_s0 = smov %s1064_s15 }
 0x341   : > { %s1331_s15 = smov %s1189_s26  ;;  %s1332_s16 = smov %s1072_s17 }
 0x342   : > { %s1333_s17 = smov %s1335_s21  ;;  %31 = sbr.rel (!%p29_p2) target bundleno = 22 (0x16), region = 116 }
 0x347   :  { %710 = vsyncpa [#allocation5], 1 }
 0x348   :  { %712 = vsyncpa [#allocation5 + $0x1], 1 }
 0x349   :  { %713 = vsyncpa [#allocation7], 1 }
 0x34a   :  { %715 = vsyncpa [#allocation7 + $0x1], 1 }

// kernel: bert_momo_share.5
= control target key start
LH: loop header
LB: loop body
LE: loop exit
PB: predicated region body
PF: predicated region fallthrough
CT: control target
= control target key end

     0   :  { %s1066_s0 = inlined_call_operand.vmem [shape: s32[2], index: 0, kind: input, shape index: {}]   ;;  %s1067_s1 = inlined_call_operand.vmem [shape: f32[2,8,32], index: 1, kind: input, shape index: {}]   ;;  %s1068_s2 = inlined_call_operand.vmem [shape: bf16[2,32,64], index: 2, kind: input, shape index: {}]   ;;  %s1069_s3 = inlined_call_operand.vmem [shape: f32[2,1,64], index: 3, kind: input, shape index: {}]   ;;  %s1070_s4 = inlined_call_operand.vmem [shape: bf16[2,64,32], index: 4, kind: input, shape index: {}]   ;;  %s1071_s5 = inlined_call_operand.vmem [shape: f32[2,1,32], index: 5, kind: input, shape index: {}]   ;;  %s1072_s6 = inlined_call_operand.vmem [shape: f32[1,32], index: 6, kind: input, shape index: {}]   ;;  %s1073_s7 = inlined_call_operand.vmem [shape: f32[1,32], index: 7, kind: input, shape index: {}]   ;;  %s1074_s8 = inlined_call_operand.vmem [shape: f32[2,8,32], index: 8, kind: output, shape index: {0}]   ;;  %s1075_s9 = inlined_call_operand.vmem [shape: f32[2,1,32], index: 9, kind: output, shape index: {1}]  }
   0x1   :  { %s15_s11 = sshll.u32 %s1066_s0, 4  ;;  %s16_s11 = int_to_ptr.vmem [resolvable:$true] %s15_s11 }
   0x2   :  { %s890_s12 = scalar_lea.vmem %s16_s11, 16  ;;  %p895_p1 = scmp.lt.s32.totalorder %s16_s11, %s16_s11 }
   0x3   :  { %p891_p0 = scmp.ne.s32.totalorder %s16_s11, %s890_s12  ;;  %p896_p2 = scmp.lt.s32.totalorder %s890_s12, %s890_s12 }
   0x5   :  { %p897_p3 = por %p896_p2, %p895_p1 }
   0x7   :  { %p898_p4 = pnand %p897_p3, %p891_p0 }
   0x9   :  { %901 = shalt.err (!%p898_p4)  }
   0xa   :  { %s928_s13 = smov [#allocation3]  }
   0xb   :  { %18 = dma.vmem_to_smem %s16_s11, 16, %s928_s13, [#allocation2] }
   0xc   :  { %914 = dma.done.wait [#allocation2], 16 }
   0xd   :  { %915 = vsyncadd [#allocation2], 4294967280 }
   0xe   :  { %20 = sfence }
   0xf   :  { %s984_s14 = smov 0   ;;  %s986_s15 = smov 0  }
  0x10   :  { %s988_s16 = smov 0  }
  0x11 LB: > { %s38_s0 = sadd.s32 1, %s922_s15  ;;  %p802_p5 = scmp.ge.s32.totalorder %s926_s16, 1  ;;  %s926_s16 = sphi %s988_s16, %s26_s16   ;;  %s922_s15 = sphi %s986_s15, %s1077_s15   ;;  %s918_s14 = sphi %s984_s14, %s1076_s14  }
  0x12   : > { %p40_p6 = scmp.ge.s32.totalorder %s38_s0, 2  ;;  %p342_p7 = scmp.lt.s32.totalorder %s926_s16, 3 }
  0x14   : > { %s1079_s0 = smov (%p40_p6, %s38_s0), 0  ;;  %p343_p8 = pnand %p802_p5, %p342_p7 }
  0x15   : > { %s410_s17 = sld [smem:[#allocation3 + %s918_s14]] (!%p343_p8)  ;;  %p403_p9 = scmp.lt.s32.totalorder (!%p343_p8), %s918_s14, 1 }
  0x16   : > { %346 = sbr.rel (%p343_p8) target bundleno = 789 (0x315), region = 48  ;;  %s422_s30 = sld [smem:[#allocation3 + %s918_s14]] (!%p343_p8) }
  0x17   : > { %s429_s24 = sld [smem:[#allocation3 + %s918_s14]] (!%p343_p8) }
  0x1b   : > { %v929_v0 = vmov 0.0   ;;  %vm930_vm0 = vmmov 0   ;;  %s1007_s18 = scalar_select %p403_p9, %s918_s14, 1  ;;  %vm643_vm1 = vcmask 253952   ;;  %vm470_vm2 = vcmask 261120  }
  0x1c   : > { %833 = vmatprep.subr.bf16.mxu0 %v929_v0  ;;  %837 = vmatprep.mubr.msk.bf16.mxu0 %vm930_vm0, %v929_v0  ;;  %p411_p10 = scmp.lt.s32.totalorder %s410_s17, 1  ;;  %p423_p11 = scmp.lt.s32.totalorder %s422_s30, 1  ;;  %vm563_vm3 = vcmask 523264   ;;  %v819_v42 = vld [vmem:[%s1072_s6] ss:$0 sm:$0xff] }
  0x1d   : > { %841 = vmatprep.subr.bf16.mxu1 %v929_v0  ;;  %849 = vmatprep.mubr.msk.bf16.mxu1 %vm930_vm0, %v929_v0  ;;  %s1013_s21 = scalar_lea.vmem %s1075_s9, %s1007_s18  ;;  %s803_s22 = sshll.u32 %s1007_s18, 3  ;;  %v820_v44 = vld [vmem:[%s1073_s7] ss:$0 sm:$0xff] }
  0x1e   : > { %644 = vst.msk [vmem:[%s1013_s21] sm:$0x1] %vm643_vm1, %v929_v0  ;;  %s1081_s17 = smov (!%p411_p10, %s410_s17), 1  ;;  %s409_s29 = scalar_lea.vmem %s1067_s1, %s803_s22 }
  0x1f   : > { %s823_s23 = sshll.u32 %s1081_s17, 4  ;;  %v445_v3 = vld [vmem:[%s409_s29] sm:$0xff]  ;;  %s1083_s30 = smov (!%p423_p11, %s422_s30), 1 }
  0x20   : > { %s415_s26 = scalar_lea.vmem %s1068_s2, %s823_s23  ;;  %v446_v4 = vpack.c.bf16 %v445_v3, %v445_v3  ;;  %s824_s10 = sshll.u32 %s1083_s30, 5 }
  0x21   : > { %v880_v1 = vld [vmem:[%s415_s26 + $0x8] sm:$0xff]   ;;  %v881_v2 = vld [vmem:[%s415_s26] sm:$0xff]   ;;  %s427_s13 = scalar_lea.vmem %s1070_s4, %s824_s10  ;;  %s417_s17 = sld [smem:[#allocation3 + %s918_s14]] }
  0x22   : > { %834 = vmatpush3.bf16.msra.mxu0 %v880_v1  ;;  %v882_v5 = vld [vmem:[%s427_s13 + $0x18] sm:$0xff]   ;;  %v883_v6 = vld [vmem:[%s427_s13 + $0x10] sm:$0xff]   ;;  %v884_v7 = vld [vmem:[%s427_s13 + $0x8] sm:$0xff]   ;;  %p430_p13 = scmp.lt.s32.totalorder %s429_s24, 1  ;;  %s440_s12 = scalar_lea.vmem %s1074_s8, %s803_s22 }
  0x23   : > { %835 = vmatprep.subr.bf16.mxu0 %v929_v0  ;;  %842 = vmatpush3.bf16.msra.mxu1 %v882_v5  ;;  %v885_v8 = vld [vmem:[%s427_s13] sm:$0xff]  }
  0x24   : > { %843 = vmatprep.subr.bf16.mxu1 %v929_v0  ;;  %s1087_s24 = smov (!%p430_p13, %s429_s24), 1 }
  0x25   : > { %s432_s27 = scalar_lea.vmem %s1071_s5, %s1087_s24  ;;  %v645_v54 = vld [vmem:[%s1013_s21] sm:$0x1] }
  0x26   : > { %836 = vmatpush3.bf16.msra.mxu0 %v881_v2  ;;  %v813_v25 = vld [vmem:[%s432_s27] ss:$0 sm:$0xff] }
  0x27   : > { %844 = vmatpush3.bf16.msra.mxu1 %v883_v6  ;;  %p418_p12 = scmp.lt.s32.totalorder %s417_s17, 1 }
  0x28   : > { %845 = vmatprep.subr.bf16.mxu1 %v929_v0 }
  0x29   : > { %838 = vmatmul.mubr.msk.bf16.vlgmr.msra.gmra.mxu0 %vm470_vm2, %v446_v4  ;;  %s1085_s17 = smov (!%p418_p12, %s417_s17), 1 }
  0x2a   : > { %s420_s23 = scalar_lea.vmem %s1069_s3, %s1085_s17 }
  0x2b   : > { %846 = vmatpush3.bf16.msra.mxu1 %v884_v7  ;;  %v809_v9 = vld [vmem:[%s420_s23] ss:$0 sm:$0xff] }
  0x2c   : > { %847 = vmatprep.subr.bf16.mxu1 %v929_v0 }
  0x2f   : > { %848 = vmatpush3.bf16.msra.mxu1 %v885_v8 }
  0xe9   : > { %v508_v10 = vpop.f32.mrf.mxu0 }
  0xea   : > { %v509_v11 = vadd.f32 %v809_v9, %v508_v10 }
  0xeb   : > { %v839_v12 = vpop.f32.mrf.mxu0 }
  0xec   : > { %v515_v13 = vmul.f32 0.044715, %v509_v11  ;;  %v514_v21 = vmul.f32 0.5, %v509_v11 }
  0xed   : > { %v511_v14 = vpop.f32.mrf.mxu0 }
  0xee   : > { %v516_v15 = vmul.f32 %v515_v13, %v509_v11 }
  0xef   : > { %v840_v16 = vpop.f32.mrf.mxu0 }
  0xf0   : > { %v517_v17 = vmul.f32 %v516_v15, %v509_v11 }
  0xf2   : > { %v518_v18 = vadd.f32 %v517_v17, %v509_v11 }
  0xf4   : > { %v519_v19 = vmul.f32 0.7978846, %v518_v18 }
  0xf6   : > { %886 = vtanh.f32 %v519_v19 }
 0x103   : > { %v887_v20 = vpop.eup %886 }
 0x104   : > { %v521_v22 = vadd.f32 1.0, %v887_v20 }
 0x106   : > { %v522_v23 = vmul.f32 %v521_v22, %v514_v21 }
 0x108   : > { %v523_v24 = vpack.c.bf16 %v522_v23, %v522_v23 }
 0x10a   : > { %850 = vmatmul.mubr.msk.bf16.vlgmr.msra.gmra.mxu1 %vm563_vm3, %v523_v24 }
 0x1ca   : > { %v601_v26 = vpop.f32.mrf.mxu1 }
 0x1cb   : > { %v602_v27 = vadd.f32 %v813_v25, %v601_v26 }
 0x1cc   : > { %v851_v28 = vpop.f32.mrf.mxu1 }
 0x1cd   : > { %v607_v29 = vadd.f32 %v602_v27, %v445_v3 }
 0x1ce   : > { %v604_v30 = vpop.f32.mrf.mxu1 }
 0x1cf   : > { %v610_v31 = vsel %vm470_vm2, %v607_v29, 0.0 }
 0x1d0   : > { %611 = vadd.xlane.f32.xlu0 %v610_v31  ;;  %v852_v32 = vpop.f32.mrf.mxu1 }
 0x259   : > { %v612_v33 = vpop.xlane.xlu0 %611 }
 0x25a   : > { %v614_v34 = vmul.f32 0.03125, %v612_v33 }
 0x25c   : > { %v615_v35 = vsub.f32 %v607_v29, %v614_v34 }
 0x25e   : > { %v616_v36 = vmul.f32 %v615_v35, %v615_v35 }
 0x260   : > { %v617_v37 = vsel %vm470_vm2, %v616_v36, 0.0 }
 0x261   : > { %618 = vadd.xlane.f32.xlu0 %v617_v37 }
 0x2ea   : > { %v619_v38 = vpop.xlane.xlu0 %618 }
 0x2eb   : > { %v620_v39 = vmul.f32 0.03125, %v619_v38 }
 0x2ed   : > { %v621_v40 = vadd.f32 1e-12, %v620_v39 }
 0x2ef   : > { %888 = vrsqrt.f32 %v621_v40 }
 0x2fc   : > { %v889_v41 = vpop.eup %888 }
 0x2fd   : > { %v623_v43 = vmul.f32 %v889_v41, %v615_v35 }
 0x2ff   : > { %v630_v45 = vmul.f32 %v819_v42, %v623_v43 }
 0x301   : > { %v637_v46 = vadd.f32 %v820_v44, %v630_v45 }
 0x303   : > { %638 = vst.msk [vmem:[%s440_s12] sm:$0xff] %vm470_vm2, %v637_v46  ;;  %v646_v47 = vsel %vm470_vm2, %v637_v46, 0.0 }
 0x304   : > { %v647_v48 = vrot.slane %v646_v47, 4 }
 0x306   : > { %v648_v49 = vadd.f32 %v647_v48, %v646_v47 }
 0x308   : > { %v649_v50 = vrot.slane %v648_v49, 2 }
 0x30a   : > { %v650_v51 = vadd.f32 %v649_v50, %v648_v49 }
 0x30c   : > { %v651_v52 = vrot.slane %v650_v51, 1 }
 0x30e   : > { %v652_v53 = vadd.f32 %v651_v52, %v650_v51 }
 0x310   : > { %v653_v55 = vmul.f32 0.125, %v652_v53 }
 0x312   : > { %v654_v56 = vadd.f32 %v653_v55, %v645_v54 }
 0x314   : > { %656 = vst.msk [vmem:[%s1013_s21] sm:$0x1] %vm643_vm1, %v654_v56 }
 0x315 PF: > { %s26_s16 = sadd.s32 1, %s926_s16   ;;  %s1076_s14 = smov %s922_s15 }
 0x316   : > { %p23_p0 = scmp.ge.s32.totalorder %s26_s16, 4   ;;  %s1077_s15 = smov %s1079_s0 }
 0x318   :  { %25 = sbr.rel (!%p23_p0) target bundleno = 17 (0x11), region = 106 }

</bundles_post_ra>
